<compile_context>
chip_gen: v7x
topology: tpu7x:2x2x1
jax: 0.10.0
libtpu: 0.0.40
codegen_flags: <defaults>
</compile_context>

<pallas_src>
import functools

import jax
import jax.numpy as jnp
from jax.experimental import pallas as pl
from jax.experimental.pallas import tpu as pltpu

POOL = 5                  # nn.MaxPool1d(5): kernel=5, stride=5, floor mode
MAX_LEN = 100             # Conv1d in_channels
EMBED_DIM = 90            # Conv1d length
FILTER_SIZES = (3, 4, 5)
NUM_FILTERS = 128
NUM_CLASSES = 2
K_MID = 5                 # conv1d1 / conv1d2 kernel size

C_PAD = 128               # in-channels padded to full lane width
L_PAD = ((EMBED_DIM + 7) // 8) * 8   # length padded to a sublane multiple (96)


def _round_up(n, m):
    return ((n + m - 1) // m) * m


# ---------------------------------------------------------------------------
# Fused forward kernel: one batch element per grid step.
# ---------------------------------------------------------------------------
def _fused_forward_kernel(
    x_ref,                                    # (L_PAD, C_PAD) f32
    wb0_ref, bb0_ref, wb1_ref, bb1_ref, wb2_ref, bb2_ref,   # branch convs
    w1_ref, b1_ref, w2_ref, b2_ref,                         # conv1d1 / conv1d2
    wf1_ref, bf1_ref, wf2_ref, bf2_ref,                     # fc1 / fc2
    o_ref,                                    # (1, NUM_CLASSES) f32
    acc_ref,                                  # (ACC_ROWS, F) f32 scratch
    act_ref,                                  # (ACT_ROWS, F) f32 scratch
    *, branch_ks, branch_lpool, l1_pool, l2_pool,
):
    def conv_relu_pool(cols, w_ref, b_ref, l_pool):
        # cols: K tap-shifted (L_use, C) f32 views -> one deep-contraction bf16 matmul.
        xc = jnp.concatenate(cols, axis=1).astype(jnp.bfloat16)        # (L_use, K*C)
        acc = jnp.dot(xc, w_ref[...], preferred_element_type=jnp.float32)
        acc = jnp.maximum(acc + b_ref[...], 0.0)                        # bias + ReLU (f32)
        if l_pool == 1:
            return jnp.max(acc, axis=0, keepdims=True)                  # (1, F)
        # MaxPool1d(POOL): single store of acc, then POOL strided row-loads + max.
        acc_ref[pl.ds(0, acc.shape[0]), :] = acc
        m = acc_ref[pl.ds(0, l_pool, stride=POOL), :]
        for j in range(1, POOL):
            m = jnp.maximum(m, acc_ref[pl.ds(j, l_pool, stride=POOL), :])
        return m                                                        # (l_pool, F)

    x = x_ref[...]                                                      # (96, 128) f32

    # --- three parallel branch convs (K = 3, 4, 5), pooled results packed into act_ref
    branches = ((wb0_ref, bb0_ref), (wb1_ref, bb1_ref), (wb2_ref, bb2_ref))
    row = 0
    for (w_ref, b_ref), k_sz, l_pool in zip(branches, branch_ks, branch_lpool):
        l_use = l_pool * POOL
        cols = [x[k:k + l_use, :] for k in range(k_sz)]
        act_ref[pl.ds(row, l_pool), :] = conv_relu_pool(cols, w_ref, b_ref, l_pool)
        row += l_pool

    # --- conv1d1 + ReLU + pool (reads the concatenated branch outputs from VMEM scratch)
    l1_use = l1_pool * POOL
    cols1 = [act_ref[pl.ds(k, l1_use), :] for k in range(K_MID)]
    y1 = conv_relu_pool(cols1, w1_ref, b1_ref, l1_pool)                 # (9, F) f32

    # --- conv1d2 + ReLU + pool (final length is 1)
    l2_use = l2_pool * POOL
    cols2 = [y1[k:k + l2_use, :] for k in range(K_MID)]
    y2 = conv_relu_pool(cols2, w2_ref, b2_ref, l2_pool)                 # (1, F) f32

    # --- flatten (L=1 so the row already is the channel-major flatten) + fc head
    # TODO(synk): nn.Dropout(p=0.2) treated as identity (inference mode).
    h = jnp.dot(y2.astype(jnp.bfloat16), wf1_ref[...],
                preferred_element_type=jnp.float32) + bf1_ref[...]      # (1, F)
    logits = jnp.dot(h.astype(jnp.bfloat16), wf2_ref[...],
                     preferred_element_type=jnp.float32) + bf2_ref[...] # (1, NUM_CLASSES)
    o_ref[...] = logits


# ---------------------------------------------------------------------------
# Wrapper: padding + single fused pallas_call
# ---------------------------------------------------------------------------
def fake_bert_cnn_forward(x_ncl, packed):
    """x_ncl: (B, max_len, embed_dim) in PyTorch Conv1d NCL layout."""
    B, c_in, length = x_ncl.shape
    assert c_in == MAX_LEN and length == EMBED_DIM

    # NCL -> channels-last (B, L, C), then pad L 90->96 (sublanes) and C 100->128 (lanes).
    x_nlc = jnp.transpose(x_ncl, (0, 2, 1))
    x_pad = jnp.pad(x_nlc, ((0, 0), (0, L_PAD - length), (0, C_PAD - c_in)))

    wb, bb, w1, b1, w2, b2, wf1, bf1, wf2, bf2 = packed

    # Static sizes for this architecture.
    branch_ks = tuple(FILTER_SIZES)
    branch_lpool = tuple((length - k + 1) // POOL for k in branch_ks)   # (17, 17, 17)
    l_cat = sum(branch_lpool)                                           # 51
    l1_pool = (l_cat - K_MID + 1) // POOL                               # 9
    l2_pool = (l1_pool - K_MID + 1) // POOL                             # 1
    acc_rows = _round_up(max(branch_lpool) * POOL, 8)                   # 88
    act_rows = _round_up(l_cat, 8)                                      # 56

    kernel = functools.partial(
        _fused_forward_kernel,
        branch_ks=branch_ks, branch_lpool=branch_lpool,
        l1_pool=l1_pool, l2_pool=l2_pool,
    )

    weight_args = [wb[0], bb[0], wb[1], bb[1], wb[2], bb[2],
                   w1, b1, w2, b2, wf1, bf1, wf2, bf2]
    # Constant index_map -> weights are DMA'd once and stay VMEM-resident across batch.
    w_specs = [pl.BlockSpec(a.shape, lambda b: (0, 0)) for a in weight_args]

    out = pl.pallas_call(
        kernel,
        out_shape=jax.ShapeDtypeStruct((B, 1, NUM_CLASSES), jnp.float32),
        grid=(B,),
        in_specs=[pl.BlockSpec((None, L_PAD, C_PAD), lambda b: (b, 0, 0))] + w_specs,
        out_specs=pl.BlockSpec((None, 1, NUM_CLASSES), lambda b: (b, 0, 0)),
        scratch_shapes=[
            pltpu.VMEM((acc_rows, NUM_FILTERS), jnp.float32),   # conv accumulator (pooling)
            pltpu.VMEM((act_rows, NUM_FILTERS), jnp.float32),   # concatenated branch output
        ],
        compiler_params=pltpu.CompilerParams(dimension_semantics=("parallel",)),
    )(x_pad, *weight_args)
    return out.reshape(B, NUM_CLASSES)


# ---------------------------------------------------------------------------
# Parameters: deterministic synthetic init in kernel-friendly layouts.
#   conv weights: (K, C_in, C_out)  (PyTorch (out, in, K) transposed), bf16
#   linear weights: (in, out), bf16 ; all biases f32
# ---------------------------------------------------------------------------
def init_params(key):
    keys = jax.random.split(key, 16)
    ki = iter(keys)

    def winit(shape, fan_in):
        w = jax.random.normal(next(ki), shape, jnp.float32) / jnp.sqrt(jnp.float32(fan_in))
        return w.astype(jnp.bfloat16)

    def binit(shape, fan_in):
        b = jax.random.normal(next(ki), shape, jnp.float32) / jnp.sqrt(jnp.float32(fan_in))
        return b.astype(jnp.float32)

    branch = []
    for k in FILTER_SIZES:
        fan = MAX_LEN * k
        branch.append((winit((k, MAX_LEN, NUM_FILTERS), fan),
                       binit((1, NUM_FILTERS), fan)))
    conv1 = (winit((K_MID, NUM_FILTERS, NUM_FILTERS), NUM_FILTERS * K_MID),
             binit((1, NUM_FILTERS), NUM_FILTERS * K_MID))
    conv2 = (winit((K_MID, NUM_FILTERS, NUM_FILTERS), NUM_FILTERS * K_MID),
             binit((1, NUM_FILTERS), NUM_FILTERS * K_MID))
    # fc1 is LazyLinear: with embed_dim=90 the final conv/pool length is 1 -> in = 128.
    fc = (winit((NUM_FILTERS, NUM_FILTERS), NUM_FILTERS),
          binit((1, NUM_FILTERS), NUM_FILTERS),
          winit((NUM_FILTERS, NUM_CLASSES), NUM_FILTERS),
          binit((1, NUM_CLASSES), NUM_FILTERS))
    return {"branch": branch, "conv1": conv1, "conv2": conv2, "fc": fc}


def pack_params(params):
    """Flatten conv weights into im2col layout (K * C_in_pad, C_out) for one-matmul taps."""
    wb, bb = [], []
    for w, b in params["branch"]:
        k, c_in, c_out = w.shape
        w_pad = jnp.pad(w, ((0, 0), (0, C_PAD - c_in), (0, 0)))   # zero-pad in-channels
        wb.append(w_pad.reshape(k * C_PAD, c_out))
        bb.append(b)

    def flat(w):
        return w.reshape(w.shape[0] * w.shape[1], w.shape[2])

    w1, b1 = params["conv1"]
    w2, b2 = params["conv2"]
    wf1, bf1, wf2, bf2 = params["fc"]
    return (tuple(wb), tuple(bb), flat(w1), b1, flat(w2), b2, wf1, bf1, wf2, bf2)


# ---------------------------------------------------------------------------
# Pure-JAX reference (same bf16-operand / f32-accumulate math, no Pallas)
# ---------------------------------------------------------------------------
def reference_forward(x_ncl, params):
    def conv_relu_pool(x_blc, w_kio, b_row):
        K = w_kio.shape[0]
        l_out = x_blc.shape[1] - K + 1
        l_pool = l_out // POOL
        l_use = l_pool * POOL
        xb = x_blc.astype(jnp.bfloat16)
        acc = sum(
            jnp.einsum("blc,co->blo", xb[:, k:k + l_use, :], w_kio[k],
                       preferred_element_type=jnp.float32)
            for k in range(K))
        acc = jnp.maximum(acc + b_row[None].astype(jnp.float32), 0.0)
        return acc.reshape(acc.shape[0], l_pool, POOL, acc.shape[-1]).max(axis=2)

    x_nlc = jnp.transpose(x_ncl, (0, 2, 1)).astype(jnp.float32)
    pooled = [conv_relu_pool(x_nlc, w, b) for (w, b) in params["branch"]]
    xc = jnp.concatenate(pooled, axis=1)
    y1 = conv_relu_pool(xc, *params["conv1"])
    y2 = conv_relu_pool(y1, *params["conv2"])
    xf = y2.reshape(y2.shape[0], -1)
    w1, b1, w2, b2 = params["fc"]
    h = jnp.dot(xf.astype(jnp.bfloat16), w1, preferred_element_type=jnp.float32) + b1
    return jnp.dot(h.astype(jnp.bfloat16), w2, preferred_element_type=jnp.float32) + b2


if __name__ == "__main__":
    B = 2
    key = jax.random.PRNGKey(0)
    k_x, k_p = jax.random.split(key)
    x = jax.random.normal(k_x, (B, MAX_LEN, EMBED_DIM), dtype=jnp.float32)

    params = init_params(k_p)
    packed = pack_params(params)

    fwd = jax.jit(fake_bert_cnn_forward)
    logits = jax.block_until_ready(fwd(x, packed))

    ref = reference_forward(x, params)
    assert logits.shape == (B, NUM_CLASSES), logits.shape
    assert bool(jnp.all(jnp.isfinite(logits)))
    assert bool(jnp.allclose(logits, ref, rtol=5e-3, atol=5e-3)), (logits, ref)
    print("KERNEL_OK")
</pallas_src>

<mosaic_0001>
module attributes {stable_mosaic.version = 11 : i64} {
  func.func @_fused_forward_kernel(%arg0: i32, %arg1: memref<1x96x128xf32, #tpu.memory_space<vmem>>, %arg2: memref<384x128xbf16, #tpu.memory_space<vmem>>, %arg3: memref<1x128xf32, #tpu.memory_space<vmem>>, %arg4: memref<512x128xbf16, #tpu.memory_space<vmem>>, %arg5: memref<1x128xf32, #tpu.memory_space<vmem>>, %arg6: memref<640x128xbf16, #tpu.memory_space<vmem>>, %arg7: memref<1x128xf32, #tpu.memory_space<vmem>>, %arg8: memref<640x128xbf16, #tpu.memory_space<vmem>>, %arg9: memref<1x128xf32, #tpu.memory_space<vmem>>, %arg10: memref<640x128xbf16, #tpu.memory_space<vmem>>, %arg11: memref<1x128xf32, #tpu.memory_space<vmem>>, %arg12: memref<128x128xbf16, #tpu.memory_space<vmem>>, %arg13: memref<1x128xf32, #tpu.memory_space<vmem>>, %arg14: memref<128x2xbf16, #tpu.memory_space<vmem>>, %arg15: memref<1x2xf32, #tpu.memory_space<vmem>>, %arg16: memref<1x1x2xf32, #tpu.memory_space<vmem>>, %arg17: memref<88x128xf32, #tpu.memory_space<vmem>>, %arg18: memref<56x128xf32, #tpu.memory_space<vmem>>) attributes {dimension_semantics = [#tpu.dimension_semantics<parallel>], iteration_bounds = array<i64: 2>, scalar_prefetch = 0 : i64, scratch_operands = 2 : i64, tpu.core_type = #tpu.core_type<tc>, window_params = [{transform_indices = @transform_0, window_bounds = array<i64: 1, 96, 128>}, {pipeline_mode = #tpu.pipeline_mode<synchronous>, transform_indices = @transform_1, window_bounds = array<i64: 384, 128>}, {pipeline_mode = #tpu.pipeline_mode<synchronous>, transform_indices = @transform_2, window_bounds = array<i64: 1, 128>}, {pipeline_mode = #tpu.pipeline_mode<synchronous>, transform_indices = @transform_3, window_bounds = array<i64: 512, 128>}, {pipeline_mode = #tpu.pipeline_mode<synchronous>, transform_indices = @transform_4, window_bounds = array<i64: 1, 128>}, {pipeline_mode = #tpu.pipeline_mode<synchronous>, transform_indices = @transform_5, window_bounds = array<i64: 640, 128>}, {pipeline_mode = #tpu.pipeline_mode<synchronous>, transform_indices = @transform_6, window_bounds = array<i64: 1, 128>}, {pipeline_mode = #tpu.pipeline_mode<synchronous>, transform_indices = @transform_7, window_bounds = array<i64: 640, 128>}, {pipeline_mode = #tpu.pipeline_mode<synchronous>, transform_indices = @transform_8, window_bounds = array<i64: 1, 128>}, {pipeline_mode = #tpu.pipeline_mode<synchronous>, transform_indices = @transform_9, window_bounds = array<i64: 640, 128>}, {pipeline_mode = #tpu.pipeline_mode<synchronous>, transform_indices = @transform_10, window_bounds = array<i64: 1, 128>}, {pipeline_mode = #tpu.pipeline_mode<synchronous>, transform_indices = @transform_11, window_bounds = array<i64: 128, 128>}, {pipeline_mode = #tpu.pipeline_mode<synchronous>, transform_indices = @transform_12, window_bounds = array<i64: 1, 128>}, {pipeline_mode = #tpu.pipeline_mode<synchronous>, transform_indices = @transform_13, window_bounds = array<i64: 128, 2>}, {pipeline_mode = #tpu.pipeline_mode<synchronous>, transform_indices = @transform_14, window_bounds = array<i64: 1, 2>}, {transform_indices = @transform_15, window_bounds = array<i64: 1, 1, 2>}]} {
    %c0 = arith.constant 0 : index
    %c0_0 = arith.constant 0 : index
    %c0_1 = arith.constant 0 : index
    %0 = vector.load %arg1[%c0, %c0_0, %c0_1] : memref<1x96x128xf32, #tpu.memory_space<vmem>>, vector<1x96x128xf32>
    %1 = vector.shape_cast %0 : vector<1x96x128xf32> to vector<96x128xf32>
    %2 = vector.extract_strided_slice %1 {offsets = [0, 0], sizes = [85, 128], strides = [1, 1]} : vector<96x128xf32> to vector<85x128xf32>
    %3 = vector.extract_strided_slice %1 {offsets = [1, 0], sizes = [85, 128], strides = [1, 1]} : vector<96x128xf32> to vector<85x128xf32>
    %4 = vector.extract_strided_slice %1 {offsets = [2, 0], sizes = [85, 128], strides = [1, 1]} : vector<96x128xf32> to vector<85x128xf32>
    %5 = tpu.concatenate %2, %3, %4 in 1 : vector<85x128xf32>, vector<85x128xf32>, vector<85x128xf32> -> vector<85x384xf32>
    %6 = arith.truncf %5 : vector<85x384xf32> to vector<85x384xbf16>
    %c0_2 = arith.constant 0 : index
    %c0_3 = arith.constant 0 : index
    %7 = vector.load %arg2[%c0_2, %c0_3] : memref<384x128xbf16, #tpu.memory_space<vmem>>, vector<384x128xbf16>
    %cst = arith.constant dense<0.000000e+00> : vector<85x128xf32>
    %8 = tpu.matmul %6, %7, %cst {dimension_numbers = #tpu.dot_dimension_numbers<[1], [0], [0], [1], [0, 0, 1, 1], [], []>} : vector<85x384xbf16>, vector<384x128xbf16>, vector<85x128xf32> -> vector<85x128xf32>
    %c0_4 = arith.constant 0 : index
    %c0_5 = arith.constant 0 : index
    %9 = vector.load %arg3[%c0_4, %c0_5] : memref<1x128xf32, #tpu.memory_space<vmem>>, vector<1x128xf32>
    %10 = vector.broadcast %9 : vector<1x128xf32> to vector<85x128xf32>
    %11 = arith.addf %8, %10 : vector<85x128xf32>
    %cst_6 = arith.constant 0.000000e+00 : f32
    %12 = vector.broadcast %cst_6 : f32 to vector<85x128xf32>
    %13 = arith.maximumf %11, %12 : vector<85x128xf32>
    %c0_7 = arith.constant 0 : index
    %c0_8 = arith.constant 0 : index
    %14 = vector.load %arg17[%c0_7, %c0_8] : memref<88x128xf32, #tpu.memory_space<vmem>>, vector<85x128xf32>
    tpu.vector_store %arg17[%c0_7, %c0_8], %13 {strides = array<i32>} : memref<88x128xf32, #tpu.memory_space<vmem>>, vector<85x128xf32>,
    %c0_9 = arith.constant 0 : index
    %c0_10 = arith.constant 0 : index
    %15 = tpu.strided_load %arg17[%c0_9, %c0_10] {strides = array<i32: 5, 1>} : memref<88x128xf32, #tpu.memory_space<vmem>>, vector<17x128xf32>
    %c1 = arith.constant 1 : index
    %c0_11 = arith.constant 0 : index
    %16 = tpu.strided_load %arg17[%c1, %c0_11] {strides = array<i32: 5, 1>} : memref<88x128xf32, #tpu.memory_space<vmem>>, vector<17x128xf32>
    %17 = arith.maximumf %15, %16 : vector<17x128xf32>
    %c2 = arith.constant 2 : index
    %c0_12 = arith.constant 0 : index
    %18 = tpu.strided_load %arg17[%c2, %c0_12] {strides = array<i32: 5, 1>} : memref<88x128xf32, #tpu.memory_space<vmem>>, vector<17x128xf32>
    %19 = arith.maximumf %17, %18 : vector<17x128xf32>
    %c3 = arith.constant 3 : index
    %c0_13 = arith.constant 0 : index
    %20 = tpu.strided_load %arg17[%c3, %c0_13] {strides = array<i32: 5, 1>} : memref<88x128xf32, #tpu.memory_space<vmem>>, vector<17x128xf32>
    %21 = arith.maximumf %19, %20 : vector<17x128xf32>
    %c4 = arith.constant 4 : index
    %c0_14 = arith.constant 0 : index
    %22 = tpu.strided_load %arg17[%c4, %c0_14] {strides = array<i32: 5, 1>} : memref<88x128xf32, #tpu.memory_space<vmem>>, vector<17x128xf32>
    %23 = arith.maximumf %21, %22 : vector<17x128xf32>
    %c0_15 = arith.constant 0 : index
    %c0_16 = arith.constant 0 : index
    %24 = vector.load %arg18[%c0_15, %c0_16] : memref<56x128xf32, #tpu.memory_space<vmem>>, vector<17x128xf32>
    tpu.vector_store %arg18[%c0_15, %c0_16], %23 {strides = array<i32>} : memref<56x128xf32, #tpu.memory_space<vmem>>, vector<17x128xf32>,
    %25 = vector.extract_strided_slice %1 {offsets = [0, 0], sizes = [85, 128], strides = [1, 1]} : vector<96x128xf32> to vector<85x128xf32>
    %26 = vector.extract_strided_slice %1 {offsets = [1, 0], sizes = [85, 128], strides = [1, 1]} : vector<96x128xf32> to vector<85x128xf32>
    %27 = vector.extract_strided_slice %1 {offsets = [2, 0], sizes = [85, 128], strides = [1, 1]} : vector<96x128xf32> to vector<85x128xf32>
    %28 = vector.extract_strided_slice %1 {offsets = [3, 0], sizes = [85, 128], strides = [1, 1]} : vector<96x128xf32> to vector<85x128xf32>
    %29 = tpu.concatenate %25, %26, %27, %28 in 1 : vector<85x128xf32>, vector<85x128xf32>, vector<85x128xf32>, vector<85x128xf32> -> vector<85x512xf32>
    %30 = arith.truncf %29 : vector<85x512xf32> to vector<85x512xbf16>
    %c0_17 = arith.constant 0 : index
    %c0_18 = arith.constant 0 : index
    %31 = vector.load %arg4[%c0_17, %c0_18] : memref<512x128xbf16, #tpu.memory_space<vmem>>, vector<512x128xbf16>
    %cst_19 = arith.constant dense<0.000000e+00> : vector<85x128xf32>
    %32 = tpu.matmul %30, %31, %cst_19 {dimension_numbers = #tpu.dot_dimension_numbers<[1], [0], [0], [1], [0, 0, 1, 1], [], []>} : vector<85x512xbf16>, vector<512x128xbf16>, vector<85x128xf32> -> vector<85x128xf32>
    %c0_20 = arith.constant 0 : index
    %c0_21 = arith.constant 0 : index
    %33 = vector.load %arg5[%c0_20, %c0_21] : memref<1x128xf32, #tpu.memory_space<vmem>>, vector<1x128xf32>
    %34 = vector.broadcast %33 : vector<1x128xf32> to vector<85x128xf32>
    %35 = arith.addf %32, %34 : vector<85x128xf32>
    %cst_22 = arith.constant 0.000000e+00 : f32
    %36 = vector.broadcast %cst_22 : f32 to vector<85x128xf32>
    %37 = arith.maximumf %35, %36 : vector<85x128xf32>
    %c0_23 = arith.constant 0 : index
    %c0_24 = arith.constant 0 : index
    %38 = vector.load %arg17[%c0_23, %c0_24] : memref<88x128xf32, #tpu.memory_space<vmem>>, vector<85x128xf32>
    tpu.vector_store %arg17[%c0_23, %c0_24], %37 {strides = array<i32>} : memref<88x128xf32, #tpu.memory_space<vmem>>, vector<85x128xf32>,
    %c0_25 = arith.constant 0 : index
    %c0_26 = arith.constant 0 : index
    %39 = tpu.strided_load %arg17[%c0_25, %c0_26] {strides = array<i32: 5, 1>} : memref<88x128xf32, #tpu.memory_space<vmem>>, vector<17x128xf32>
    %c1_27 = arith.constant 1 : index
    %c0_28 = arith.constant 0 : index
    %40 = tpu.strided_load %arg17[%c1_27, %c0_28] {strides = array<i32: 5, 1>} : memref<88x128xf32, #tpu.memory_space<vmem>>, vector<17x128xf32>
    %41 = arith.maximumf %39, %40 : vector<17x128xf32>
    %c2_29 = arith.constant 2 : index
    %c0_30 = arith.constant 0 : index
    %42 = tpu.strided_load %arg17[%c2_29, %c0_30] {strides = array<i32: 5, 1>} : memref<88x128xf32, #tpu.memory_space<vmem>>, vector<17x128xf32>
    %43 = arith.maximumf %41, %42 : vector<17x128xf32>
    %c3_31 = arith.constant 3 : index
    %c0_32 = arith.constant 0 : index
    %44 = tpu.strided_load %arg17[%c3_31, %c0_32] {strides = array<i32: 5, 1>} : memref<88x128xf32, #tpu.memory_space<vmem>>, vector<17x128xf32>
    %45 = arith.maximumf %43, %44 : vector<17x128xf32>
    %c4_33 = arith.constant 4 : index
    %c0_34 = arith.constant 0 : index
    %46 = tpu.strided_load %arg17[%c4_33, %c0_34] {strides = array<i32: 5, 1>} : memref<88x128xf32, #tpu.memory_space<vmem>>, vector<17x128xf32>
    %47 = arith.maximumf %45, %46 : vector<17x128xf32>
    %c17 = arith.constant 17 : index
    %c0_35 = arith.constant 0 : index
    %48 = vector.load %arg18[%c17, %c0_35] : memref<56x128xf32, #tpu.memory_space<vmem>>, vector<17x128xf32>
    tpu.vector_store %arg18[%c17, %c0_35], %47 {strides = array<i32>} : memref<56x128xf32, #tpu.memory_space<vmem>>, vector<17x128xf32>,
    %49 = vector.extract_strided_slice %1 {offsets = [0, 0], sizes = [85, 128], strides = [1, 1]} : vector<96x128xf32> to vector<85x128xf32>
    %50 = vector.extract_strided_slice %1 {offsets = [1, 0], sizes = [85, 128], strides = [1, 1]} : vector<96x128xf32> to vector<85x128xf32>
    %51 = vector.extract_strided_slice %1 {offsets = [2, 0], sizes = [85, 128], strides = [1, 1]} : vector<96x128xf32> to vector<85x128xf32>
    %52 = vector.extract_strided_slice %1 {offsets = [3, 0], sizes = [85, 128], strides = [1, 1]} : vector<96x128xf32> to vector<85x128xf32>
    %53 = vector.extract_strided_slice %1 {offsets = [4, 0], sizes = [85, 128], strides = [1, 1]} : vector<96x128xf32> to vector<85x128xf32>
    %54 = tpu.concatenate %49, %50, %51, %52, %53 in 1 : vector<85x128xf32>, vector<85x128xf32>, vector<85x128xf32>, vector<85x128xf32>, vector<85x128xf32> -> vector<85x640xf32>
    %55 = arith.truncf %54 : vector<85x640xf32> to vector<85x640xbf16>
    %c0_36 = arith.constant 0 : index
    %c0_37 = arith.constant 0 : index
    %56 = vector.load %arg6[%c0_36, %c0_37] : memref<640x128xbf16, #tpu.memory_space<vmem>>, vector<640x128xbf16>
    %cst_38 = arith.constant dense<0.000000e+00> : vector<85x128xf32>
    %57 = tpu.matmul %55, %56, %cst_38 {dimension_numbers = #tpu.dot_dimension_numbers<[1], [0], [0], [1], [0, 0, 1, 1], [], []>} : vector<85x640xbf16>, vector<640x128xbf16>, vector<85x128xf32> -> vector<85x128xf32>
    %c0_39 = arith.constant 0 : index
    %c0_40 = arith.constant 0 : index
    %58 = vector.load %arg7[%c0_39, %c0_40] : memref<1x128xf32, #tpu.memory_space<vmem>>, vector<1x128xf32>
    %59 = vector.broadcast %58 : vector<1x128xf32> to vector<85x128xf32>
    %60 = arith.addf %57, %59 : vector<85x128xf32>
    %cst_41 = arith.constant 0.000000e+00 : f32
    %61 = vector.broadcast %cst_41 : f32 to vector<85x128xf32>
    %62 = arith.maximumf %60, %61 : vector<85x128xf32>
    %c0_42 = arith.constant 0 : index
    %c0_43 = arith.constant 0 : index
    %63 = vector.load %arg17[%c0_42, %c0_43] : memref<88x128xf32, #tpu.memory_space<vmem>>, vector<85x128xf32>
    tpu.vector_store %arg17[%c0_42, %c0_43], %62 {strides = array<i32>} : memref<88x128xf32, #tpu.memory_space<vmem>>, vector<85x128xf32>,
    %c0_44 = arith.constant 0 : index
    %c0_45 = arith.constant 0 : index
    %64 = tpu.strided_load %arg17[%c0_44, %c0_45] {strides = array<i32: 5, 1>} : memref<88x128xf32, #tpu.memory_space<vmem>>, vector<17x128xf32>
    %c1_46 = arith.constant 1 : index
    %c0_47 = arith.constant 0 : index
    %65 = tpu.strided_load %arg17[%c1_46, %c0_47] {strides = array<i32: 5, 1>} : memref<88x128xf32, #tpu.memory_space<vmem>>, vector<17x128xf32>
    %66 = arith.maximumf %64, %65 : vector<17x128xf32>
    %c2_48 = arith.constant 2 : index
    %c0_49 = arith.constant 0 : index
    %67 = tpu.strided_load %arg17[%c2_48, %c0_49] {strides = array<i32: 5, 1>} : memref<88x128xf32, #tpu.memory_space<vmem>>, vector<17x128xf32>
    %68 = arith.maximumf %66, %67 : vector<17x128xf32>
    %c3_50 = arith.constant 3 : index
    %c0_51 = arith.constant 0 : index
    %69 = tpu.strided_load %arg17[%c3_50, %c0_51] {strides = array<i32: 5, 1>} : memref<88x128xf32, #tpu.memory_space<vmem>>, vector<17x128xf32>
    %70 = arith.maximumf %68, %69 : vector<17x128xf32>
    %c4_52 = arith.constant 4 : index
    %c0_53 = arith.constant 0 : index
    %71 = tpu.strided_load %arg17[%c4_52, %c0_53] {strides = array<i32: 5, 1>} : memref<88x128xf32, #tpu.memory_space<vmem>>, vector<17x128xf32>
    %72 = arith.maximumf %70, %71 : vector<17x128xf32>
    %c34 = arith.constant 34 : index
    %c0_54 = arith.constant 0 : index
    %73 = vector.load %arg18[%c34, %c0_54] : memref<56x128xf32, #tpu.memory_space<vmem>>, vector<17x128xf32>
    tpu.vector_store %arg18[%c34, %c0_54], %72 {strides = array<i32>} : memref<56x128xf32, #tpu.memory_space<vmem>>, vector<17x128xf32>,
    %c0_55 = arith.constant 0 : index
    %c0_56 = arith.constant 0 : index
    %74 = vector.load %arg18[%c0_55, %c0_56] : memref<56x128xf32, #tpu.memory_space<vmem>>, vector<45x128xf32>
    %c1_57 = arith.constant 1 : index
    %c0_58 = arith.constant 0 : index
    %75 = vector.load %arg18[%c1_57, %c0_58] : memref<56x128xf32, #tpu.memory_space<vmem>>, vector<45x128xf32>
    %c2_59 = arith.constant 2 : index
    %c0_60 = arith.constant 0 : index
    %76 = vector.load %arg18[%c2_59, %c0_60] : memref<56x128xf32, #tpu.memory_space<vmem>>, vector<45x128xf32>
    %c3_61 = arith.constant 3 : index
    %c0_62 = arith.constant 0 : index
    %77 = vector.load %arg18[%c3_61, %c0_62] : memref<56x128xf32, #tpu.memory_space<vmem>>, vector<45x128xf32>
    %c4_63 = arith.constant 4 : index
    %c0_64 = arith.constant 0 : index
    %78 = vector.load %arg18[%c4_63, %c0_64] : memref<56x128xf32, #tpu.memory_space<vmem>>, vector<45x128xf32>
    %79 = tpu.concatenate %74, %75, %76, %77, %78 in 1 : vector<45x128xf32>, vector<45x128xf32>, vector<45x128xf32>, vector<45x128xf32>, vector<45x128xf32> -> vector<45x640xf32>
    %80 = arith.truncf %79 : vector<45x640xf32> to vector<45x640xbf16>
    %c0_65 = arith.constant 0 : index
    %c0_66 = arith.constant 0 : index
    %81 = vector.load %arg8[%c0_65, %c0_66] : memref<640x128xbf16, #tpu.memory_space<vmem>>, vector<640x128xbf16>
    %cst_67 = arith.constant dense<0.000000e+00> : vector<45x128xf32>
    %82 = tpu.matmul %80, %81, %cst_67 {dimension_numbers = #tpu.dot_dimension_numbers<[1], [0], [0], [1], [0, 0, 1, 1], [], []>} : vector<45x640xbf16>, vector<640x128xbf16>, vector<45x128xf32> -> vector<45x128xf32>
    %c0_68 = arith.constant 0 : index
    %c0_69 = arith.constant 0 : index
    %83 = vector.load %arg9[%c0_68, %c0_69] : memref<1x128xf32, #tpu.memory_space<vmem>>, vector<1x128xf32>
    %84 = vector.broadcast %83 : vector<1x128xf32> to vector<45x128xf32>
    %85 = arith.addf %82, %84 : vector<45x128xf32>
    %cst_70 = arith.constant 0.000000e+00 : f32
    %86 = vector.broadcast %cst_70 : f32 to vector<45x128xf32>
    %87 = arith.maximumf %85, %86 : vector<45x128xf32>
    %c0_71 = arith.constant 0 : index
    %c0_72 = arith.constant 0 : index
    %88 = vector.load %arg17[%c0_71, %c0_72] : memref<88x128xf32, #tpu.memory_space<vmem>>, vector<45x128xf32>
    tpu.vector_store %arg17[%c0_71, %c0_72], %87 {strides = array<i32>} : memref<88x128xf32, #tpu.memory_space<vmem>>, vector<45x128xf32>,
    %c0_73 = arith.constant 0 : index
    %c0_74 = arith.constant 0 : index
    %89 = tpu.strided_load %arg17[%c0_73, %c0_74] {strides = array<i32: 5, 1>} : memref<88x128xf32, #tpu.memory_space<vmem>>, vector<9x128xf32>
    %c1_75 = arith.constant 1 : index
    %c0_76 = arith.constant 0 : index
    %90 = tpu.strided_load %arg17[%c1_75, %c0_76] {strides = array<i32: 5, 1>} : memref<88x128xf32, #tpu.memory_space<vmem>>, vector<9x128xf32>
    %91 = arith.maximumf %89, %90 : vector<9x128xf32>
    %c2_77 = arith.constant 2 : index
    %c0_78 = arith.constant 0 : index
    %92 = tpu.strided_load %arg17[%c2_77, %c0_78] {strides = array<i32: 5, 1>} : memref<88x128xf32, #tpu.memory_space<vmem>>, vector<9x128xf32>
    %93 = arith.maximumf %91, %92 : vector<9x128xf32>
    %c3_79 = arith.constant 3 : index
    %c0_80 = arith.constant 0 : index
    %94 = tpu.strided_load %arg17[%c3_79, %c0_80] {strides = array<i32: 5, 1>} : memref<88x128xf32, #tpu.memory_space<vmem>>, vector<9x128xf32>
    %95 = arith.maximumf %93, %94 : vector<9x128xf32>
    %c4_81 = arith.constant 4 : index
    %c0_82 = arith.constant 0 : index
    %96 = tpu.strided_load %arg17[%c4_81, %c0_82] {strides = array<i32: 5, 1>} : memref<88x128xf32, #tpu.memory_space<vmem>>, vector<9x128xf32>
    %97 = arith.maximumf %95, %96 : vector<9x128xf32>
    %98 = vector.extract_strided_slice %97 {offsets = [0, 0], sizes = [5, 128], strides = [1, 1]} : vector<9x128xf32> to vector<5x128xf32>
    %99 = vector.extract_strided_slice %97 {offsets = [1, 0], sizes = [5, 128], strides = [1, 1]} : vector<9x128xf32> to vector<5x128xf32>
    %100 = vector.extract_strided_slice %97 {offsets = [2, 0], sizes = [5, 128], strides = [1, 1]} : vector<9x128xf32> to vector<5x128xf32>
    %101 = vector.extract_strided_slice %97 {offsets = [3, 0], sizes = [5, 128], strides = [1, 1]} : vector<9x128xf32> to vector<5x128xf32>
    %102 = vector.extract_strided_slice %97 {offsets = [4, 0], sizes = [5, 128], strides = [1, 1]} : vector<9x128xf32> to vector<5x128xf32>
    %103 = tpu.concatenate %98, %99, %100, %101, %102 in 1 : vector<5x128xf32>, vector<5x128xf32>, vector<5x128xf32>, vector<5x128xf32>, vector<5x128xf32> -> vector<5x640xf32>
    %104 = arith.truncf %103 : vector<5x640xf32> to vector<5x640xbf16>
    %c0_83 = arith.constant 0 : index
    %c0_84 = arith.constant 0 : index
    %105 = vector.load %arg10[%c0_83, %c0_84] : memref<640x128xbf16, #tpu.memory_space<vmem>>, vector<640x128xbf16>
    %cst_85 = arith.constant dense<0.000000e+00> : vector<5x128xf32>
    %106 = tpu.matmul %104, %105, %cst_85 {dimension_numbers = #tpu.dot_dimension_numbers<[1], [0], [0], [1], [0, 0, 1, 1], [], []>} : vector<5x640xbf16>, vector<640x128xbf16>, vector<5x128xf32> -> vector<5x128xf32>
    %c0_86 = arith.constant 0 : index
    %c0_87 = arith.constant 0 : index
    %107 = vector.load %arg11[%c0_86, %c0_87] : memref<1x128xf32, #tpu.memory_space<vmem>>, vector<1x128xf32>
    %108 = vector.broadcast %107 : vector<1x128xf32> to vector<5x128xf32>
    %109 = arith.addf %106, %108 : vector<5x128xf32>
    %cst_88 = arith.constant 0.000000e+00 : f32
    %110 = vector.broadcast %cst_88 : f32 to vector<5x128xf32>
    %111 = arith.maximumf %109, %110 : vector<5x128xf32>
    %cst_89 = arith.constant dense<0xFF800000> : vector<128xf32>
    %112 = vector.multi_reduction <maximumf>, %111, %cst_89 [0] : vector<5x128xf32> to vector<128xf32>
    %113 = vector.shape_cast %112 : vector<128xf32> to vector<1x128xf32>
    %114 = arith.truncf %113 : vector<1x128xf32> to vector<1x128xbf16>
    %c0_90 = arith.constant 0 : index
    %c0_91 = arith.constant 0 : index
    %115 = vector.load %arg12[%c0_90, %c0_91] : memref<128x128xbf16, #tpu.memory_space<vmem>>, vector<128x128xbf16>
    %cst_92 = arith.constant dense<0.000000e+00> : vector<1x128xf32>
    %116 = tpu.matmul %114, %115, %cst_92 {dimension_numbers = #tpu.dot_dimension_numbers<[1], [0], [0], [1], [0, 0, 1, 1], [], []>} : vector<1x128xbf16>, vector<128x128xbf16>, vector<1x128xf32> -> vector<1x128xf32>
    %c0_93 = arith.constant 0 : index
    %c0_94 = arith.constant 0 : index
    %117 = vector.load %arg13[%c0_93, %c0_94] : memref<1x128xf32, #tpu.memory_space<vmem>>, vector<1x128xf32>
    %118 = arith.addf %116, %117 : vector<1x128xf32>
    %119 = arith.truncf %118 : vector<1x128xf32> to vector<1x128xbf16>
    %c0_95 = arith.constant 0 : index
    %c0_96 = arith.constant 0 : index
    %120 = vector.load %arg14[%c0_95, %c0_96] : memref<128x2xbf16, #tpu.memory_space<vmem>>, vector<128x2xbf16>
    %cst_97 = arith.constant dense<0.000000e+00> : vector<1x2xf32>
    %121 = tpu.matmul %119, %120, %cst_97 {dimension_numbers = #tpu.dot_dimension_numbers<[1], [0], [0], [1], [0, 0, 1, 1], [], []>} : vector<1x128xbf16>, vector<128x2xbf16>, vector<1x2xf32> -> vector<1x2xf32>
    %c0_98 = arith.constant 0 : index
    %c0_99 = arith.constant 0 : index
    %122 = vector.load %arg15[%c0_98, %c0_99] : memref<1x2xf32, #tpu.memory_space<vmem>>, vector<1x2xf32>
    %123 = arith.addf %121, %122 : vector<1x2xf32>
    %c0_100 = arith.constant 0 : index
    %c0_101 = arith.constant 0 : index
    %c0_102 = arith.constant 0 : index
    %124 = vector.load %arg16[%c0_100, %c0_101, %c0_102] : memref<1x1x2xf32, #tpu.memory_space<vmem>>, vector<1x1x2xf32>
    %125 = vector.shape_cast %124 : vector<1x1x2xf32> to vector<1x2xf32>
    %126 = vector.shape_cast %123 : vector<1x2xf32> to vector<1x1x2xf32>
    tpu.vector_store %arg16[%c0_100, %c0_101, %c0_102], %126 {strides = array<i32>} : memref<1x1x2xf32, #tpu.memory_space<vmem>>, vector<1x1x2xf32>,
    return
  }
  func.func @transform_0(%arg0: i32) -> (i32, i32, i32) {
    %c0_i32 = arith.constant 0 : i32
    %c0_i32_0 = arith.constant 0 : i32
    %c0_i32_1 = arith.constant 0 : i32
    return %arg0, %c0_i32, %c0_i32_0 : i32, i32, i32
  }
  func.func @transform_1(%arg0: i32) -> (i32, i32) {
    %c0_i32 = arith.constant 0 : i32
    %c0_i32_0 = arith.constant 0 : i32
    %c0_i32_1 = arith.constant 0 : i32
    return %c0_i32, %c0_i32_0 : i32, i32
  }
  func.func @transform_2(%arg0: i32) -> (i32, i32) {
    %c0_i32 = arith.constant 0 : i32
    %c0_i32_0 = arith.constant 0 : i32
    %c0_i32_1 = arith.constant 0 : i32
    return %c0_i32, %c0_i32_0 : i32, i32
  }
  func.func @transform_3(%arg0: i32) -> (i32, i32) {
    %c0_i32 = arith.constant 0 : i32
    %c0_i32_0 = arith.constant 0 : i32
    %c0_i32_1 = arith.constant 0 : i32
    return %c0_i32, %c0_i32_0 : i32, i32
  }
  func.func @transform_4(%arg0: i32) -> (i32, i32) {
    %c0_i32 = arith.constant 0 : i32
    %c0_i32_0 = arith.constant 0 : i32
    %c0_i32_1 = arith.constant 0 : i32
    return %c0_i32, %c0_i32_0 : i32, i32
  }
  func.func @transform_5(%arg0: i32) -> (i32, i32) {
    %c0_i32 = arith.constant 0 : i32
    %c0_i32_0 = arith.constant 0 : i32
    %c0_i32_1 = arith.constant 0 : i32
    return %c0_i32, %c0_i32_0 : i32, i32
  }
  func.func @transform_6(%arg0: i32) -> (i32, i32) {
    %c0_i32 = arith.constant 0 : i32
    %c0_i32_0 = arith.constant 0 : i32
    %c0_i32_1 = arith.constant 0 : i32
    return %c0_i32, %c0_i32_0 : i32, i32
  }
  func.func @transform_7(%arg0: i32) -> (i32, i32) {
    %c0_i32 = arith.constant 0 : i32
    %c0_i32_0 = arith.constant 0 : i32
    %c0_i32_1 = arith.constant 0 : i32
    return %c0_i32, %c0_i32_0 : i32, i32
  }
  func.func @transform_8(%arg0: i32) -> (i32, i32) {
    %c0_i32 = arith.constant 0 : i32
    %c0_i32_0 = arith.constant 0 : i32
    %c0_i32_1 = arith.constant 0 : i32
    return %c0_i32, %c0_i32_0 : i32, i32
  }
  func.func @transform_9(%arg0: i32) -> (i32, i32) {
    %c0_i32 = arith.constant 0 : i32
    %c0_i32_0 = arith.constant 0 : i32
    %c0_i32_1 = arith.constant 0 : i32
    return %c0_i32, %c0_i32_0 : i32, i32
  }
  func.func @transform_10(%arg0: i32) -> (i32, i32) {
    %c0_i32 = arith.constant 0 : i32
    %c0_i32_0 = arith.constant 0 : i32
    %c0_i32_1 = arith.constant 0 : i32
    return %c0_i32, %c0_i32_0 : i32, i32
  }
  func.func @transform_11(%arg0: i32) -> (i32, i32) {
    %c0_i32 = arith.constant 0 : i32
    %c0_i32_0 = arith.constant 0 : i32
    %c0_i32_1 = arith.constant 0 : i32
    return %c0_i32, %c0_i32_0 : i32, i32
  }
  func.func @transform_12(%arg0: i32) -> (i32, i32) {
    %c0_i32 = arith.constant 0 : i32
    %c0_i32_0 = arith.constant 0 : i32
    %c0_i32_1 = arith.constant 0 : i32
    return %c0_i32, %c0_i32_0 : i32, i32
  }
  func.func @transform_13(%arg0: i32) -> (i32, i32) {
    %c0_i32 = arith.constant 0 : i32
    %c0_i32_0 = arith.constant 0 : i32
    %c0_i32_1 = arith.constant 0 : i32
    return %c0_i32, %c0_i32_0 : i32, i32
  }
  func.func @transform_14(%arg0: i32) -> (i32, i32) {
    %c0_i32 = arith.constant 0 : i32
    %c0_i32_0 = arith.constant 0 : i32
    %c0_i32_1 = arith.constant 0 : i32
    return %c0_i32, %c0_i32_0 : i32, i32
  }
  func.func @transform_15(%arg0: i32) -> (i32, i32, i32) {
    %c0_i32 = arith.constant 0 : i32
    %c0_i32_0 = arith.constant 0 : i32
    %c0_i32_1 = arith.constant 0 : i32
    return %arg0, %c0_i32, %c0_i32_0 : i32, i32, i32
  }
}

</mosaic_0001>

<bundles_post_ra>
// kernel: fake_bert_cnn_forward.1
= control target key start
LH: loop header
LB: loop body
LE: loop exit
PB: predicated region body
PF: predicated region fallthrough
CT: control target
= control target key end

     0   :  { %s6219_s0 = inlined_call_operand.vmem [shape: f32[2,96,128], index: 0, kind: input, shape index: {}]   ;;  %s6220_s1 = inlined_call_operand.vmem [shape: bf16[384,128], index: 1, kind: input, shape index: {}]   ;;  %s6221_s2 = inlined_call_operand.vmem [shape: f32[1,128], index: 2, kind: input, shape index: {}]   ;;  %s6222_s3 = inlined_call_operand.hbm [shape: bf16[512,128], index: 3, kind: input, shape index: {}]   ;;  %s6223_s4 = inlined_call_operand.vmem [shape: f32[1,128], index: 4, kind: input, shape index: {}]   ;;  %s6224_s5 = inlined_call_operand.vmem [shape: bf16[640,128], index: 5, kind: input, shape index: {}]   ;;  %s6225_s6 = inlined_call_operand.vmem [shape: f32[1,128], index: 6, kind: input, shape index: {}]   ;;  %s6226_s7 = inlined_call_operand.vmem [shape: bf16[640,128], index: 7, kind: input, shape index: {}]   ;;  %s6227_s8 = inlined_call_operand.hbm [shape: f32[1,128], index: 8, kind: input, shape index: {}]   ;;  %s6228_s9 = inlined_call_operand.hbm [shape: bf16[640,128], index: 9, kind: input, shape index: {}]   ;;  %s6229_s10 = inlined_call_operand.hbm [shape: f32[1,128], index: 10, kind: input, shape index: {}]   ;;  %s6230_s11 = inlined_call_operand.hbm [shape: bf16[128,128], index: 11, kind: input, shape index: {}]   ;;  %s6231_s12 = inlined_call_operand.hbm [shape: f32[1,128], index: 12, kind: input, shape index: {}]   ;;  %s6232_s13 = inlined_call_operand.vmem [shape: bf16[128,2], index: 13, kind: input, shape index: {}]   ;;  %s6233_s14 = inlined_call_operand.hbm [shape: f32[1,2], index: 14, kind: input, shape index: {}]   ;;  %s6234_s15 = inlined_call_operand.hbm [shape: f32[2,1,2], index: 15, kind: output, shape index: {}]  }
   0x1   :  { %6248 = sst [smem:[#allocation30_spill]] %s6227_s8 }
   0x2   :  { %6249 = sst [smem:[#allocation31_spill]] %s6229_s10 }
   0x3   :  { %6250 = sst [smem:[#allocation32_spill]] %s6234_s15 }
   0x4   :  { %20 = vsyncpa [#allocation5], 0 }
   0x5   :  { %21 = vsyncpa [#allocation8], 0 }
   0x6   :  { %22 = vsyncpa [#allocation11], 0 }
   0x7   :  { %23 = vsyncpa [#allocation14], 0 }
   0x8   :  { %24 = vsyncpa [#allocation6], 0 }
   0x9   :  { %26 = vsyncpa [#allocation6 + $0x1], 0  ;;  %s5168_s18 = smov 0   ;;  %s5170_s19 = smov 0  }
   0xa   :  { %s5172_s20 = smov 0   ;;  %s5174_s21 = smov 0  }
   0xb LB: > { %6251 = sst [smem:[#allocation22_spill]] %s5062_s18  ;;  %s5189_s22 = sadd.s32 4294967295, %s5074_s21   ;;  %s5074_s21 = sphi %s5174_s21, %s6284_s21   ;;  %s5070_s20 = sphi %s5172_s20, %s6287_s20   ;;  %s5066_s19 = sphi %s5170_s19, %s6286_s19   ;;  %s5062_s18 = sphi %s5168_s18, %s6285_s18  }
   0xc   : > { %6252 = sst [smem:[#allocation23_spill]] %s5066_s19  ;;  %s3692_s23 = sadd.s32 4294967294, %s5074_s21  }
   0xd   : > { %6253 = sst [smem:[#allocation24_spill]] %s5070_s20  ;;  %s5193_s24 = sadd.s32 1, %s5074_s21  }
   0xe   : > { %6254 = sst [smem:[#allocation25_spill]] %s5074_s21  ;;  %s359_s25 = sadd.s32 1, %s5070_s20 }
   0xf   : > { %6255 = sst [smem:[#allocation26_spill]] %s5193_s24  ;;  %s356_s26 = ssub.s32 %s5074_s21, %s5193_s24 }
  0x10   : > { %p369_p0 = scmp.ne.s32.totalorder %s5070_s20, %s5066_s19  ;;  %p357_p1 = scmp.eq.s32.totalorder %s356_s26, 0 }
  0x11   : > { %p370_p2 = scmp.eq.s32.totalorder %s5189_s22, 1  ;;  %p375_p3 = scmp.ne.s32.totalorder %s5066_s19, %s5062_s18 }
  0x12   : > { %p376_p4 = scmp.eq.s32.totalorder %s3692_s23, 1  ;;  %p3693_p7 = scmp.ge.s32.totalorder %s5074_s21, 1 }
  0x13   : > { %s5204_s27 = scalar_select %p357_p1, %s5070_s20, %s359_s25  }
  0x14   : > { %p5206_p5 = por %p370_p2, %p369_p0  ;;  %p5210_p6 = por %p376_p4, %p375_p3 }
  0x15   : > { %6256 = sst [smem:[#allocation27_spill]] %s5204_s27  ;;  %p383_p8 = scmp.lt.s32.totalorder %s5074_s21, 3 }
  0x16   : > { %s6257_s28 = scalar_select %p5206_p5, 1, 0 }
  0x17   : > { %s6259_s29 = scalar_select %p5210_p6, 1, 0 }
  0x18   : > { %6258 = sst [smem:[#allocation28_spill]] %s6257_s28  ;;  %p6242_p9 = scmp.eq.s32.totalorder %s5189_s22, 0 }
  0x19   : > { %6260 = sst [smem:[#allocation29_spill]] %s6259_s29  ;;  %p5217_p10 = pnand %p3693_p7, %p383_p8 }
  0x1a   : > { %s5076_s16 = smov [#allocation7]   ;;  %s5077_s23 = smov [#allocation10]  }
  0x1b   : > { %s6261_s30 = scalar_select %p5217_p10, 1, 0 }
  0x1c   : > { %s427_s17 = sshll.u32 %s5076_s16, 4  ;;  %p4524_p11 = pneg %p5217_p10  ;;  %s428_s17 = int_to_ptr.vmem [resolvable:$true] %s427_s17 }
  0x1d   : > { %s451_s25 = sshll.u32 %s5077_s23, 4  ;;  %s5078_s27 = smov [#allocation13]   ;;  %s5229_s25 = int_to_ptr.vmem [resolvable:$true] %s451_s25 }
  0x1e   : > { %p5225_p12 = pnand %p6242_p9, %p4524_p11  ;;  %s475_s20 = sshll.u32 %s5078_s27, 4  ;;  %s5231_s20 = int_to_ptr.vmem [resolvable:$true] %s475_s20 }
  0x1f   : > { %s6263_s8 = sld [smem:[#allocation30_spill]] }
  0x20   : > { %p5241_p0 = pneg %p5225_p12 }
  0x25   : > { %s4800_s16 = scalar_lea.hbm %s6263_s8, 16 }
  0x26   : > { %p4801_p13 = scmp.ne.s32.totalorder %s6263_s8, %s4800_s16  ;;  %p4807_p3 = scmp.lt.u32.totalorder %s4800_s16, %s6263_s8 }
  0x28   : > { %p4803_p1 = pnand %p5241_p0, %p4801_p13 }
  0x2a   : > { %p4804_p2 = pneg %p4803_p1 }
  0x2c   : > { %p4809_p4 = pnand %p4807_p3, %p4804_p2 }
  0x2e   : > { %4812 = shalt.err (!%p4809_p4)
}
  0x2f   : > { %s4813_s24 = scalar_lea.vmem %s428_s17, 16  ;;  %s4820_s18 = scalar_lea.vmem %s428_s17, 32 }
  0x30   : > { %p4814_p7 = scmp.ne.s32.totalorder %s428_s17, %s4813_s24  ;;  %p4821_p9 = scmp.lt.s32.totalorder %s428_s17, %s428_s17 }
  0x31   : > { %p4822_p6 = scmp.lt.s32.totalorder %s4820_s18, %s4813_s24 }
  0x32   : > { %p4816_p8 = pnand %p4814_p7, %p5241_p0 }
  0x33   : > { %p4823_p5 = por %p4822_p6, %p4821_p9 }
  0x34   : > { %p4817_p11 = pneg %p4816_p8 }
  0x36   : > { %p4824_p10 = pnand %p4823_p5, %p4817_p11 }
  0x38   : > { %4827 = shalt.err (!%p4824_p10)
}
  0x39   : > { %4530 = dma.hbm_to_vmem [thread:$0]  (!%p5225_p12), %s6263_s8, 16, %s428_s17, [#allocation8]  }
  0x3a   : > { %s6265_s10 = sld [smem:[#allocation31_spill]] }
  0x40   : > { %s4828_s27 = scalar_lea.hbm %s6265_s10, 16 }
  0x41   : > { %p4829_p13 = scmp.ne.s32.totalorder %s6265_s10, %s4828_s27  ;;  %p4835_p5 = scmp.lt.u32.totalorder %s4828_s27, %s6265_s10 }
  0x43   : > { %p4831_p1 = pnand %p4829_p13, %p5241_p0 }
  0x45   : > { %p4832_p6 = pneg %p4831_p1 }
  0x47   : > { %p4837_p9 = pnand %p4835_p5, %p4832_p6 }
  0x49   : > { %4840 = shalt.err (!%p4837_p9)
}
  0x4a   : > { %s4841_s17 = scalar_lea.vmem %s5229_s25, 16  ;;  %s4848_s19 = scalar_lea.vmem %s5229_s25, 32 }
  0x4b   : > { %p4842_p10 = scmp.ne.s32.totalorder %s5229_s25, %s4841_s17  ;;  %p4849_p4 = scmp.lt.s32.totalorder %s5229_s25, %s5229_s25 }
  0x4c   : > { %p4850_p7 = scmp.lt.s32.totalorder %s4848_s19, %s4841_s17 }
  0x4d   : > { %p4844_p2 = pnand %p4842_p10, %p5241_p0 }
  0x4e   : > { %p4851_p8 = por %p4850_p7, %p4849_p4 }
  0x4f   : > { %p4845_p3 = pneg %p4844_p2 }
  0x51   : > { %p4852_p11 = pnand %p4851_p8, %p4845_p3 }
  0x53   : > { %4855 = shalt.err (!%p4852_p11)
}
  0x54   : > { %4536 = dma.hbm_to_vmem [thread:$0]  (!%p5225_p12), %s6265_s10, 16, %s5229_s25, [#allocation11]  }
  0x55   : > { %s4856_s16 = scalar_lea.hbm %s6231_s12, 16 }
  0x56   : > { %p4857_p13 = scmp.ne.s32.totalorder %s6231_s12, %s4856_s16  ;;  %p4863_p5 = scmp.lt.u32.totalorder %s4856_s16, %s6231_s12 }
  0x58   : > { %p4859_p1 = pnand %p4857_p13, %p5241_p0 }
  0x5a   : > { %p4860_p6 = pneg %p4859_p1 }
  0x5c   : > { %p4865_p9 = pnand %p4863_p5, %p4860_p6 }
  0x5e   : > { %4868 = shalt.err (!%p4865_p9)
}
  0x5f   : > { %s4869_s25 = scalar_lea.vmem %s5231_s20, 16  ;;  %s4876_s19 = scalar_lea.vmem %s5231_s20, 32 }
  0x60   : > { %p4870_p10 = scmp.ne.s32.totalorder %s5231_s20, %s4869_s25  ;;  %p4877_p4 = scmp.lt.s32.totalorder %s5231_s20, %s5231_s20 }
  0x61   : > { %p4878_p7 = scmp.lt.s32.totalorder %s4876_s19, %s4869_s25 }
  0x62   : > { %p4872_p2 = pnand %p4870_p10, %p5241_p0 }
  0x63   : > { %p4879_p8 = por %p4878_p7, %p4877_p4 }
  0x64   : > { %p4873_p3 = pneg %p4872_p2 }
  0x66   : > { %p4880_p11 = pnand %p4879_p8, %p4873_p3 }
  0x68   : > { %4883 = shalt.err (!%p4880_p11)
}
  0x69   : > { %4542 = dma.hbm_to_vmem [thread:$0]  (!%p5225_p12), %s6231_s12, 16, %s5231_s20, [#allocation14]  }
  0x6a   : > { %s5079_s29 = smov [#allocation4]   ;;  %s4884_s24 = scalar_lea.hbm %s6222_s3, 4096 }
  0x6b   : > { %s401_s15 = sshll.u32 %s5079_s29, 4  ;;  %p4885_p13 = scmp.ne.s32.totalorder %s6222_s3, %s4884_s24  ;;  %s402_s15 = int_to_ptr.vmem [resolvable:$true] %s401_s15 }
  0x6c   : > { %p4891_p5 = scmp.lt.u32.totalorder %s4884_s24, %s6222_s3 }
  0x6d   : > { %p4887_p1 = pnand %p4885_p13, %p5241_p0 }
  0x6f   : > { %p4888_p6 = pneg %p4887_p1 }
  0x71   : > { %p4893_p9 = pnand %p4891_p5, %p4888_p6 }
  0x73   : > { %4896 = shalt.err (!%p4893_p9)
}
  0x74   : > { %s4897_s20 = scalar_lea.vmem %s402_s15, 4096  ;;  %p4905_p4 = scmp.lt.s32.totalorder %s402_s15, %s402_s15 }
  0x75   : > { %p4898_p10 = scmp.ne.s32.totalorder %s402_s15, %s4897_s20  ;;  %p4906_p7 = scmp.lt.s32.totalorder %s4897_s20, %s4897_s20 }
  0x77   : > { %p4900_p2 = pnand %p4898_p10, %p5241_p0  ;;  %p4907_p8 = por %p4906_p7, %p4905_p4 }
  0x79   : > { %p4901_p3 = pneg %p4900_p2 }
  0x7b   : > { %p4908_p11 = pnand %p4907_p8, %p4901_p3 }
  0x7d   : > { %4911 = shalt.err (!%p4908_p11)
}
  0x7e   : > { %s5080_s28 = smov 64   ;;  %s5081_s21 = smov 4  }
  0x7f   : > { %4527 = dma.hbm_to_vmem [thread:$0]  (!%p5225_p12), %s6222_s3, 4096, %s402_s15, [#allocation5], %s5080_s28, %s5080_s28, %s5081_s21  }
  0x80   : > { %s5082_s27 = smov [#allocation9]   ;;  %s5083_s18 = smov [#allocation12]  }
  0x81   : > { %s437_s24 = sshll.u32 %s5082_s27, 4  ;;  %s461_s17 = sshll.u32 %s5083_s18, 4  ;;  %s438_s24 = int_to_ptr.vmem [resolvable:$true] %s437_s24  ;;  %s5326_s17 = int_to_ptr.vmem [resolvable:$true] %s461_s17 }
  0x82   : > { %s4912_s20 = scalar_lea.hbm %s6228_s9, 5120 }
  0x83   : > { %p4913_p13 = scmp.ne.s32.totalorder %s6228_s9, %s4912_s20  ;;  %p4919_p5 = scmp.lt.u32.totalorder %s4912_s20, %s6228_s9 }
  0x85   : > { %p4915_p1 = pnand %p4913_p13, %p5241_p0 }
  0x87   : > { %p4916_p6 = pneg %p4915_p1 }
  0x89   : > { %p4921_p9 = pnand %p4919_p5, %p4916_p6 }
  0x8b   : > { %4924 = shalt.err (!%p4921_p9)
}
  0x8c   : > { %s4925_s16 = scalar_lea.vmem %s438_s24, 5120  ;;  %p4933_p4 = scmp.lt.s32.totalorder %s438_s24, %s438_s24 }
  0x8d   : > { %p4926_p10 = scmp.ne.s32.totalorder %s438_s24, %s4925_s16  ;;  %p4934_p7 = scmp.lt.s32.totalorder %s4925_s16, %s4925_s16 }
  0x8f   : > { %p4928_p2 = pnand %p4926_p10, %p5241_p0  ;;  %p4935_p8 = por %p4934_p7, %p4933_p4 }
  0x91   : > { %p4929_p3 = pneg %p4928_p2 }
  0x93   : > { %p4936_p11 = pnand %p4935_p8, %p4929_p3 }
  0x95   : > { %4939 = shalt.err (!%p4936_p11)
}
  0x96   : > { %4533 = dma.hbm_to_vmem [thread:$0]  (!%p5225_p12), %s6228_s9, 5120, %s438_s24, [#allocation8], %s5080_s28, %s5080_s28, %s5081_s21  }
  0x97   : > { %s4940_s25 = scalar_lea.hbm %s6230_s11, 1024 }
  0x98   : > { %p4941_p13 = scmp.ne.s32.totalorder %s6230_s11, %s4940_s25  ;;  %p4947_p5 = scmp.lt.u32.totalorder %s4940_s25, %s6230_s11 }
  0x9a   : > { %p4943_p1 = pnand %p4941_p13, %p5241_p0 }
  0x9c   : > { %p4944_p6 = pneg %p4943_p1 }
  0x9e   : > { %p4949_p9 = pnand %p4947_p5, %p4944_p6 }
  0xa0   : > { %4952 = shalt.err (!%p4949_p9)
}
  0xa1   : > { %s4953_s24 = scalar_lea.vmem %s5326_s17, 1024  ;;  %p4961_p4 = scmp.lt.s32.totalorder %s5326_s17, %s5326_s17 }
  0xa2   : > { %p4954_p10 = scmp.ne.s32.totalorder %s5326_s17, %s4953_s24  ;;  %p4962_p7 = scmp.lt.s32.totalorder %s4953_s24, %s4953_s24 }
  0xa4   : > { %p4956_p2 = pnand %p4954_p10, %p5241_p0  ;;  %p4963_p8 = por %p4962_p7, %p4961_p4 }
  0xa6   : > { %p4957_p3 = pneg %p4956_p2 }
  0xa8   : > { %p4964_p11 = pnand %p4963_p8, %p4957_p3 }
  0xaa   : > { %4967 = shalt.err (!%p4964_p11)
}
  0xab   : > { %4539 = dma.hbm_to_vmem [thread:$0]  (!%p5225_p12), %s6230_s11, 1024, %s5326_s17, [#allocation11], %s5080_s28, %s5080_s28, %s5081_s21  }
  0xac   : > { %s5084_s10 = smov [#allocation15]   ;;  %s4968_s19 = scalar_lea.hbm %s6233_s14, 16 }
  0xad   : > { %s489_s27 = sshll.u32 %s5084_s10, 4  ;;  %p4969_p13 = scmp.ne.s32.totalorder %s6233_s14, %s4968_s19  ;;  %s490_s27 = int_to_ptr.vmem [resolvable:$true] %s489_s27 }
  0xae   : > { %p4975_p5 = scmp.lt.u32.totalorder %s4968_s19, %s6233_s14 }
  0xaf   : > { %p4971_p1 = pnand %p4969_p13, %p5241_p0 }
  0xb1   : > { %p4972_p6 = pneg %p4971_p1 }
  0xb3   : > { %p4977_p9 = pnand %p4975_p5, %p4972_p6 }
  0xb5   : > { %4980 = shalt.err (!%p4977_p9)
}
  0xb6   : > { %s4981_s28 = scalar_lea.vmem %s490_s27, 16  ;;  %s4988_s21 = scalar_lea.vmem %s490_s27, 32 }
  0xb7   : > { %p4982_p10 = scmp.ne.s32.totalorder %s490_s27, %s4981_s28  ;;  %p4989_p4 = scmp.lt.s32.totalorder %s490_s27, %s490_s27 }
  0xb8   : > { %p4990_p7 = scmp.lt.s32.totalorder %s4988_s21, %s4981_s28 }
  0xb9   : > { %p4984_p2 = pnand %p4982_p10, %p5241_p0 }
  0xba   : > { %p4991_p8 = por %p4990_p7, %p4989_p4 }
  0xbb   : > { %p4985_p3 = pneg %p4984_p2 }
  0xbd   : > { %p4992_p11 = pnand %p4991_p8, %p4985_p3 }
  0xbf   : > { %4995 = shalt.err (!%p4992_p11)
}
  0xc0   : > { %4545 = dma.hbm_to_vmem [thread:$0]  (!%p5225_p12), %s6233_s14, 16, %s490_s27, [#allocation14]  }
  0xc1   : > { %p6266_p13 = scmp.ne.s32.totalorder %s6261_s30, 0 }
  0xc2   : > { %p6267_p1 = scmp.eq.s32.totalorder (!%p6266_p13), %s5189_s22, 0 }
  0xc3   : > { %510 = sbr.rel (%p6266_p13) target bundleno = 1606 (0x646), region = 80 }
  0xca   : > { %5041 = dma.done.wait (%p6267_p1), [#allocation5], 4096   ;;  %p6268_p0 = pmov %p6267_p1 }
  0xcc   : > { %5043 = vsyncadd (%p6268_p0), [#allocation5], 4294963200  ;;  %p6269_p6 = pmov %p6268_p0 }
  0xcd   : > { %p6270_p5 = pmov %p6268_p0 }
  0xce   : > { %5045 = dma.done.wait (%p6269_p6), [#allocation8], 5136  }
  0xcf   : > { %5047 = vsyncadd (%p6270_p5), [#allocation8], 4294962160  ;;  %p6271_p9 = pmov %p6268_p0 }
  0xd0   : > { %p6272_p12 = pmov %p6268_p0 }
  0xd1   : > { %5049 = dma.done.wait (%p6271_p9), [#allocation11], 1040  }
  0xd2   : > { %5051 = vsyncadd (%p6272_p12), [#allocation11], 4294966256  ;;  %p6273_p10 = pmov %p6268_p0 }
  0xd3   : > { %p6274_p2 = pmov %p6268_p0 }
  0xd4   : > { %5053 = dma.done.wait (%p6273_p10), [#allocation14], 32  }
  0xd5   : > { %5055 = vsyncadd (%p6274_p2), [#allocation14], 4294967264  ;;  %v4608_v0 = vld [vmem:[%s6220_s1 + $0x40] sm:$0xff]   ;;  %v4611_v3 = vld [vmem:[%s6220_s1 + $0x48] sm:$0xff]   ;;  %p581_p3 = scmp.lt.s32.totalorder %s5189_s22, 1  ;;  %vm610_vm0 = vcmask 1046528  }
  0xd6   : > { %v4609_v1 = vld [vmem:[%s6220_s1 + $0x80] sm:$0xff]   ;;  %3911 = vmatprep.subr.bf16.mxu0 %v4608_v0  ;;  %v4612_v4 = vld [vmem:[%s6220_s1 + $0x88] sm:$0xff]   ;;  %v4614_v6 = vld [vmem:[%s6220_s1 + $0x50] sm:$0xff]   ;;  %vm643_vm1 = vcmask 1045504   ;;  %vm1634_vm2 = vcmask 1043456   ;;  %vm1119_vm3 = vcmask 1044480  }
  0xd7   : > { %v4610_v2 = vld [vmem:[%s6220_s1] sm:$0xff]   ;;  %4349 = vmatprep.subr.bf16.mxu1 %v4609_v1  ;;  %v4613_v5 = vld [vmem:[%s6220_s1 + $0x8] sm:$0xff]   ;;  %v4615_v7 = vld [vmem:[%s6220_s1 + $0x90] sm:$0xff]   ;;  %s582_s15 = scalar_select %p581_p3, %s5189_s22, 1  ;;  %vm5086_vm4 = vmmov 0   ;;  %vm3553_vm5 = vcmask 8192  }
  0xd8   : > { %3912 = vmatpush3.bf16.msra.mxu0 %v4610_v2  ;;  %4350 = vmatpush3.bf16.msra.mxu1 %v4609_v1  ;;  %v4616_v8 = vld [vmem:[%s6220_s1 + $0x10] sm:$0xff]   ;;  %v4617_v9 = vld [vmem:[%s6220_s1 + $0x58] sm:$0xff]   ;;  %v4620_v12 = vld [vmem:[%s6220_s1 + $0x60] sm:$0xff]   ;;  %s6275_s30 = sld [smem:[#allocation23_spill]]  ;;  %s6276_s10 = sld [smem:[#allocation28_spill]] }
  0xd9   : > { %3913 = vmatprep.subr.bf16.mxu0 %v4611_v3  ;;  %4351 = vmatprep.subr.bf16.mxu1 %v4612_v4  ;;  %v4618_v10 = vld [vmem:[%s6220_s1 + $0x98] sm:$0xff]   ;;  %v4621_v13 = vld [vmem:[%s6220_s1 + $0xa0] sm:$0xff]   ;;  %v4623_v15 = vld [vmem:[%s6220_s1 + $0x68] sm:$0xff]   ;;  %s4493_s26 = smul.u32 96, %s582_s15  ;;  %s3908_s27 = sshll.u32 %s5189_s22, 4 }
  0xda   : > { %v4619_v11 = vld [vmem:[%s6220_s1 + $0x18] sm:$0xff]   ;;  %v4622_v14 = vld [vmem:[%s6220_s1 + $0x20] sm:$0xff]   ;;  %v4624_v16 = vld [vmem:[%s6220_s1 + $0xa8] sm:$0xff]   ;;  %s6277_s20 = sld [smem:[#allocation32_spill]]  ;;  %s5087_s21 = smov [#allocation16]  }
  0xdb   : > { %v4625_v17 = vld [vmem:[%s6220_s1 + $0x28] sm:$0xff]   ;;  %v4626_v18 = vld [vmem:[%s6220_s1 + $0x70] sm:$0xff]   ;;  %s5476_s29 = scalar_lea.vmem %s6219_s0, %s4493_s26  ;;  %v4629_v21 = vld [vmem:[%s6220_s1 + $0x78] sm:$0xff]   ;;  %s5000_s17 = sshll.u32 %s5087_s21, 4  ;;  %s5001_s17 = int_to_ptr.vmem [resolvable:$false] %s5000_s17 }
  0xdc   : > { %3914 = vmatpush3.bf16.msra.mxu0 %v4613_v5  ;;  %4352 = vmatpush3.bf16.msra.mxu1 %v4612_v4  ;;  %v4627_v19 = vld [vmem:[%s6220_s1 + $0xb0] sm:$0xff]   ;;  %v4630_v22 = vld [vmem:[%s6220_s1 + $0xb8] sm:$0xff]   ;;  %v5488_v23 = vld [vmem:[%s5476_s29] sm:$0xff]  ;;  %s5002_s16 = scalar_lea.vmem %s5001_s17, 32 }
  0xdd   : > { %3915 = vmatprep.subr.bf16.mxu0 %v4614_v6  ;;  %4353 = vmatprep.subr.bf16.mxu1 %v4615_v7  ;;  %v4628_v20 = vld [vmem:[%s6220_s1 + $0x30] sm:$0xff]   ;;  %v5491_v24 = vld [vmem:[%s5476_s29 + $0x8] sm:$0xff]  ;;  %v611_v26 = vrot.slane %v5488_v23, 1  ;;  %v644_v29 = vrot.slane %v5488_v23, 2  ;;  %v5501_v30 = vld [vmem:[%s5476_s29 + $0x18] sm:$0xff] }
  0xde   : > { %v5494_v25 = vld [vmem:[%s5476_s29 + $0x10] sm:$0xff]  ;;  %v612_v27 = vrot.slane %v5491_v24, 1  ;;  %v5504_v31 = vld [vmem:[%s5476_s29 + $0x20] sm:$0xff]  ;;  %v645_v32 = vrot.slane %v5491_v24, 2  ;;  %v649_v34 = vrot.slane %v5501_v30, 2  ;;  %v4631_v35 = vld [vmem:[%s6220_s1 + $0x38] sm:$0xff]   ;;  %v5529_v48 = vpack.c.bf16 %v5491_v24, %v5488_v23 }
  0xdf   : > { %v614_v28 = vrot.slane %v5494_v25, 1  ;;  %v647_v33 = vrot.slane %v5494_v25, 2  ;;  %v651_v38 = vrot.slane %v5504_v31, 2  ;;  %v4632_v45 = vld [vmem:[#allocation4 + $0x40] sm:$0xff]   ;;  %v616_v46 = vrot.slane %v5501_v30, 1  ;;  %v4634_v53 = vld [vmem:[#allocation4 + $0x48] sm:$0xff]  }
  0xe0   : > { %3916 = vmatpush3.bf16.msra.mxu0 %v4616_v8  ;;  %4354 = vmatpush3.bf16.msra.mxu1 %v4615_v7  ;;  %v613_v36 = vsel %vm610_vm0, %v611_v26, %v612_v27  ;;  %v646_v40 = vsel %vm643_vm1, %v644_v29, %v645_v32  ;;  %v618_v47 = vrot.slane %v5504_v31, 1  ;;  %v4633_v51 = vld [vmem:[#allocation4] sm:$0xff]   ;;  %v4635_v55 = vld [vmem:[#allocation4 + $0x8] sm:$0xff]   ;;  %v5538_v57 = vld [vmem:[%s5476_s29 + $0x28] sm:$0xff]  ;;  %s579_s8 = sand.u32 1, %s6275_s30   ;;  %s6278_s15 = smov %s6277_s20 }
  0xe1   : > { %3917 = vmatprep.subr.bf16.mxu0 %v4617_v9  ;;  %4355 = vmatprep.subr.bf16.mxu1 %v4618_v10  ;;  %v615_v37 = vsel %vm610_vm0, %v612_v27, %v614_v28  ;;  %v648_v41 = vsel %vm643_vm1, %v645_v32, %v647_v33  ;;  %v650_v43 = vsel %vm643_vm1, %v647_v33, %v649_v34  ;;  %v4639_v56 = vld [vmem:[#allocation4 + $0xc0] sm:$0xff]   ;;  %v653_v59 = vrot.slane %v5538_v57, 2  ;;  %v4636_v61 = vld [vmem:[#allocation4 + $0x50] sm:$0xff]   ;;  %v5552_v2 = vld [vmem:[%s5476_s29 + $0x38] sm:$0xff]  ;;  %s580_s18 = scalar_lea.vmem [#allocation16], %s579_s8  ;;  %s6177_s24 = scalar_lea.hbm %s6277_s20, %s3908_s27 }
  0xe2   : > { %v5515_v39 = vpack.c.bf16 %v615_v37, %v613_v36  ;;  %v5519_v42 = vpack.c.bf16 %v648_v41, %v646_v40  ;;  %v652_v44 = vsel %vm643_vm1, %v649_v34, %v651_v38  ;;  %v617_v50 = vsel %vm610_vm0, %v614_v28, %v616_v46  ;;  %v5541_v58 = vld [vmem:[%s5476_s29 + $0x30] sm:$0xff]  ;;  %v5555_v3 = vld [vmem:[%s5476_s29 + $0x40] sm:$0xff]  ;;  %s3568_s25 = sshll.u32 %s580_s18, 4  ;;  %s3556_s22 = scalar_lea.sflag [#allocation6], %s579_s8  ;;  %s6179_s25 = int_to_ptr.vmem [resolvable:$true] %s3568_s25 }
  0xe3   : > { %v5531_v49 = vpack.c.bf16 %v652_v44, %v650_v43  ;;  %v619_v52 = vsel %vm610_vm0, %v616_v46, %v618_v47  ;;  %v655_v60 = vrot.slane %v5541_v58, 2  ;;  %v620_v62 = vrot.slane %v5538_v57, 1  ;;  %v4641_v1 = vld [vmem:[#allocation4 + $0x80] sm:$0xff]   ;;  %v4649_v41 = vld [vmem:[#allocation4 + $0xd0] sm:$0xff]   ;;  %v4646_v43 = vld [vmem:[#allocation4 + $0x68] sm:$0xff]   ;;  %s4996_s28 = scalar_lea.vmem %s6179_s25, 16  ;;  %p5003_p13 = scmp.lt.s32.totalorder %s6179_s25, %s5001_s17 }
  0xe4   : > { %3918 = vmatpush3.bf16.msra.mxu0 %v4619_v11  ;;  %4356 = vmatpush3.bf16.msra.mxu1 %v4618_v10  ;;  %v5535_v54 = vpack.c.bf16 %v619_v52, %v617_v50  ;;  %v654_v63 = vsel %vm643_vm1, %v651_v38, %v653_v59  ;;  %v622_v4 = vrot.slane %v5541_v58, 1  ;;  %v657_v6 = vrot.slane %v5552_v2, 2  ;;  %v4637_v10 = vld [vmem:[#allocation4 + $0x10] sm:$0xff]   ;;  %v5583_v26 = vld [vmem:[%s5476_s29 + $0x50] sm:$0xff]  ;;  %v4647_v50 = vld [vmem:[#allocation4 + $0x28] sm:$0xff]   ;;  %p4997_p4 = scmp.ne.s32.totalorder %s6179_s25, %s4996_s28  ;;  %p6279_p7 = scmp.ne.s32.totalorder %s6276_s10, 0 }
  0xe5   : > { %3919 = vmatprep.subr.bf16.mxu0 %v4620_v12  ;;  %4357 = vmatprep.subr.bf16.mxu1 %v4621_v13  ;;  %v656_v0 = vsel %vm643_vm1, %v653_v59, %v655_v60  ;;  %v659_v7 = vrot.slane %v5555_v3, 2  ;;  %v621_v8 = vsel %vm610_vm0, %v618_v47, %v620_v62  ;;  %v5565_v9 = vpack.c.bf16 %v5501_v30, %v5494_v25  ;;  %v4638_v12 = vld [vmem:[#allocation4 + $0x58] sm:$0xff]   ;;  %v4642_v29 = vld [vmem:[#allocation4 + $0x60] sm:$0xff]   ;;  %v4651_v46 = vld [vmem:[#allocation4 + $0x90] sm:$0xff]   ;;  %p5004_p1 = scmp.lt.s32.totalorder %s5002_s16, %s4996_s28 }
  0xe6   : > { %925 = vmatprep.mubr.bf16.mxu0 %v5515_v39  ;;  %4365 = vmatprep.mubr.bf16.mxu1 %v5519_v42  ;;  %v5558_v5 = vpack.c.bf16 %v656_v0, %v654_v63  ;;  %v623_v11 = vsel %vm610_vm0, %v620_v62, %v622_v4  ;;  %v663_v28 = vrot.slane %v5583_v26, 2  ;;  %v4643_v34 = vld [vmem:[#allocation4 + $0x20] sm:$0xff]   ;;  %v5594_v37 = vpack.c.bf16 %v5538_v57, %v5504_v31  ;;  %v4653_v52 = vld [vmem:[#allocation4 + $0xd8] sm:$0xff]   ;;  %p4998_p8 = pnand %p4997_p4, %p6279_p7 }
  0xe7   : > { %v5605_v47 = vrot.slane %v5583_v26, 1  ;;  %v4655_v59 = vld [vmem:[#allocation4 + $0x98] sm:$0xff]   ;;  %v1640_v63 = vrot.slane %v5501_v30, 4  ;;  %v4656_v0 = vld [vmem:[#allocation4 + $0xe0] sm:$0xff]   ;;  %p5005_p0 = por %p5004_p1, %p5003_p13 }
  0xe8   : > { %3920 = vmatpush3.bf16.msra.mxu0 %v4622_v14  ;;  %4358 = vmatpush3.bf16.msra.mxu1 %v4621_v13  ;;  %v658_v13 = vsel %vm643_vm1, %v655_v60, %v657_v6  ;;  %v660_v14 = vsel %vm643_vm1, %v657_v6, %v659_v7  ;;  %v5598_v40 = vpack.c.bf16 %v663_v28, %v663_v28  ;;  %p4999_p11 = pneg %p4998_p8 }
  0xe9   : > { %3921 = vmatprep.subr.bf16.mxu0 %v4623_v15  ;;  %4359 = vmatprep.subr.bf16.mxu1 %v4624_v16  ;;  %v5571_v15 = vpack.c.bf16 %v623_v11, %v621_v8  ;;  %v5627_v6 = vpack.c.bf16 %v5552_v2, %v5541_v58  ;;  %v1644_v11 = vrot.slane %v5538_v57, 4 }
  0xea   : > { %p5006_p6 = pnand %p5005_p0, %p4999_p11 }
  0xec   : > { %3922 = vmatpush3.bf16.msra.mxu0 %v4625_v17  ;;  %4360 = vmatpush3.bf16.msra.mxu1 %v4624_v16  ;;  %v624_v16 = vrot.slane %v5552_v2, 1  ;;  %v5574_v17 = vpack.c.bf16 %v660_v14, %v658_v13 }
  0xed   : > { %3923 = vmatprep.subr.bf16.mxu0 %v4626_v18  ;;  %4361 = vmatprep.subr.bf16.mxu1 %v4627_v19  ;;  %v4644_v18 = vld [vmem:[#allocation4 + $0xc8] sm:$0xff]  }
  0xee   : > { %v625_v32 = vsel %vm610_vm0, %v622_v4, %v624_v16  ;;  %v1642_v4 = vrot.slane %v5504_v31, 4 }
  0xf0   : > { %3924 = vmatpush3.bf16.msra.mxu0 %v4628_v20  ;;  %4362 = vmatpush3.bf16.msra.mxu1 %v4627_v19  ;;  %v626_v19 = vrot.slane %v5555_v3, 1  ;;  %v4645_v20 = vld [vmem:[#allocation4 + $0x88] sm:$0xff]   ;;  %v5638_v14 = vsel %vm1634_vm2, %v1640_v63, %v1642_v4 }
  0xf1   : > { %3925 = vmatprep.subr.bf16.mxu0 %v4629_v21  ;;  %4363 = vmatprep.subr.bf16.mxu1 %v4630_v22  ;;  %v4640_v21 = vld [vmem:[#allocation4 + $0x18] sm:$0xff]  }
  0xf2   : > { %v627_v33 = vsel %vm610_vm0, %v624_v16, %v626_v19  ;;  %v1646_v16 = vrot.slane %v5541_v58, 4 }
  0xf3   : > { %v5600_v44 = vpack.c.bf16 %v627_v33, %v625_v32  ;;  %v4654_v32 = vld [vmem:[#allocation4 + $0x38] sm:$0xff]  }
  0xf4   : > { %3926 = vmatpush3.bf16.msra.mxu0 %v4631_v35  ;;  %4364 = vmatpush3.bf16.msra.mxu1 %v4630_v22  ;;  %v5580_v22 = vld [vmem:[%s5476_s29 + $0x48] sm:$0xff] }
  0xf5   : > { %3977 = vmatprep.subr.bf16.mxu1 %v4632_v45  ;;  %4029 = vmatprep.subr.bf16.mxu0 %v4639_v56  ;;  %v661_v27 = vrot.slane %v5580_v22, 2  ;;  %v628_v45 = vrot.slane %v5580_v22, 1  ;;  %v1638_v56 = vrot.slane %v5494_v25, 4 }
  0xf7   : > { %926 = vmatmul.mubr.bf16.vlgmr.msra.gmra.mrb[0].mxu0 %v5529_v48  ;;  %4366 = vmatmul.mubr.bf16.vlgmr.msra.gmra.mrb[0].mxu1 %v5531_v49  ;;  %v662_v35 = vsel %vm643_vm1, %v659_v7, %v661_v27  ;;  %v664_v36 = vsel %vm643_vm1, %v661_v27, %v663_v28  ;;  %v629_v60 = vsel %vm610_vm0, %v626_v19, %v628_v45  ;;  %v4650_v7 = vld [vmem:[#allocation4 + $0x30] sm:$0xff]   ;;  %v4660_v27 = vld [vmem:[#allocation4 + $0xe8] sm:$0xff]  }
  0xf8   : > { %3978 = vmatpush3.bf16.msra.mxu1 %v4633_v51  ;;  %933 = vmatprep.mubr.bf16.mxu0 %v5535_v54  ;;  %v5596_v38 = vpack.c.bf16 %v664_v36, %v662_v35  ;;  %v1635_v51 = vrot.slane %v5488_v23, 4  ;;  %v5648_v28 = vsel %vm1634_vm2, %v1644_v11, %v1646_v16  ;;  %v1652_v35 = vrot.slane %v5580_v22, 4  ;;  %v4657_v36 = vld [vmem:[%s6224_s5 + $0x40] sm:$0xff]  }
  0xf9   : > { %3979 = vmatprep.subr.bf16.mxu1 %v4634_v53  ;;  %4030 = vmatpush3.bf16.msra.mxu0 %v4641_v1  ;;  %v1636_v53 = vrot.slane %v5491_v24, 4 }
  0xfa   : > { %4369 = vmatprep.mubr.bf16.mxu1 %v5558_v5  ;;  %4031 = vmatprep.subr.bf16.mxu0 %v4644_v18  ;;  %v4658_v18 = vld [vmem:[#allocation4 + $0xa0] sm:$0xff]  }
  0xfb   : > { %v5617_v62 = vsel %vm1634_vm2, %v1635_v51, %v1636_v53  ;;  %v5622_v1 = vsel %vm1634_vm2, %v1636_v53, %v1638_v56  ;;  %v4664_v51 = vld [vmem:[#allocation4 + $0xf0] sm:$0xff]   ;;  %v5678_v53 = vpack.c.bf16 %v5580_v22, %v5555_v3 }
  0xfc   : > { %3980 = vmatpush3.bf16.msra.mxu1 %v4635_v55  ;;  %v4648_v55 = vld [vmem:[#allocation4 + $0x70] sm:$0xff]   ;;  %v1669_v8 = vpack.c.bf16 %v5622_v1, %v5617_v62 }
  0xfd   : > { %3981 = vmatprep.subr.bf16.mxu1 %v4636_v61  ;;  %4032 = vmatpush3.bf16.msra.mxu0 %v4645_v20  ;;  %v631_v61 = vsel %vm610_vm0, %v628_v45, %v5605_v47  ;;  %v5644_v20 = vsel %vm1634_vm2, %v1642_v4, %v1644_v11  ;;  %v4661_v45 = vld [vmem:[#allocation4 + $0xa8] sm:$0xff]   ;;  %v1123_v4 = vrot.slane %v5494_v25, 3  ;;  %v4668_v25 = vld [vmem:[#allocation4 + $0xb8] sm:$0xff]  }
  0xfe   : > { %4033 = vmatprep.subr.bf16.mxu0 %v4649_v41  ;;  %v5635_v13 = vpack.c.bf16 %v631_v61, %v629_v60  ;;  %v1671_v33 = vpack.c.bf16 %v5648_v28, %v5644_v20  ;;  %v1120_v60 = vrot.slane %v5488_v23, 3  ;;  %v4662_v61 = vld [vmem:[%s6224_s5 + $0x48] sm:$0xff]   ;;  %v4717_v20 = vld [vmem:[%s6226_s7 + $0x80] sm:$0xff]   ;;  %v4718_v28 = vld [vmem:[%s6226_s7 + $0x70] sm:$0xff]  }
  0xff   : > { %934 = vmatmul.mubr.bf16.gmra.mrb[4].mxu0 %v5565_v9  ;;  %4370 = vmatmul.mubr.bf16.gmra.mrb[4].mxu1 %v5574_v17  ;;  %v4663_v23 = vld [vmem:[%s6224_s5 + $0x8] sm:$0xff]  }
 0x100   : > { %3982 = vmatpush3.bf16.msra.mxu1 %v4637_v10  ;;  %941 = vmatprep.mubr.bf16.mxu0 %v5571_v15  ;;  %v5632_v10 = vsel %vm1634_vm2, %v1638_v56, %v1640_v63  ;;  %v4659_v56 = vld [vmem:[%s6224_s5] sm:$0xff]   ;;  %v1121_v63 = vrot.slane %v5491_v24, 3  ;;  %v4667_v24 = vld [vmem:[%s6224_s5 + $0x50] sm:$0xff]  }
 0x101   : > { %3983 = vmatprep.subr.bf16.mxu1 %v4638_v12  ;;  %4373 = vmatprep.mubr.bf16.mxu1 %v5596_v38  ;;  %v4652_v12 = vld [vmem:[#allocation4 + $0x78] sm:$0xff]   ;;  %v1670_v19 = vpack.c.bf16 %v5638_v14, %v5632_v10  ;;  %v4713_v10 = vld [vmem:[%s6226_s7 + $0x20] sm:$0xff]  }
 0x102   : > { %4034 = vmatpush3.bf16.msra.mxu0 %v4651_v46  ;;  %v1124_v11 = vsel %vm1119_vm3, %v1121_v63, %v1123_v4  ;;  %v4715_v14 = vld [vmem:[%s6226_s7 + $0x28] sm:$0xff]  }
 0x103   : > { %4035 = vmatprep.subr.bf16.mxu0 %v4653_v52 }
 0x104   : > { %3984 = vmatpush3.bf16.msra.mxu1 %v4640_v21  ;;  %v1648_v21 = vrot.slane %v5552_v2, 4 }
 0x105   : > { %3985 = vmatprep.subr.bf16.mxu1 %v4642_v29  ;;  %v1650_v29 = vrot.slane %v5555_v3, 4 }
 0x106   : > { %4036 = vmatpush3.bf16.msra.mxu0 %v4655_v59  ;;  %v5687_v59 = vpack.c.bf16 %v5605_v47, %v5605_v47  ;;  %v4666_v47 = vld [vmem:[#allocation4 + $0xf8] sm:$0xff]  }
 0x107   : > { %942 = vmatmul.mubr.bf16.gmra.mrb[8].mxu0 %v5594_v37  ;;  %4374 = vmatmul.mubr.bf16.gmra.mrb[8].mxu1 %v5598_v40  ;;  %v5663_v41 = vsel %vm1634_vm2, %v1648_v21, %v1650_v29 }
 0x108   : > { %3986 = vmatpush3.bf16.msra.mxu1 %v4643_v34  ;;  %949 = vmatprep.mubr.bf16.mxu0 %v5600_v44  ;;  %v5655_v34 = vsel %vm1634_vm2, %v1646_v16, %v1648_v21  ;;  %v4669_v16 = vld [vmem:[%s6224_s5 + $0x10] sm:$0xff]  }
 0x109   : > { %3987 = vmatprep.subr.bf16.mxu1 %v4646_v43  ;;  %1453 = vmatprep.mubr.bf16.mxu1 %v5515_v39  ;;  %v1654_v43 = vrot.slane %v5583_v26, 4  ;;  %v1672_v46 = vpack.c.bf16 %v5663_v41, %v5655_v34  ;;  %v4720_v34 = vld [vmem:[%s6226_s7 + $0xc8] sm:$0xff]  }
 0x10a   : > { %4037 = vmatprep.subr.bf16.mxu0 %v4656_v0  ;;  %v4665_v0 = vld [vmem:[#allocation4 + $0xb0] sm:$0xff]   ;;  %v4721_v41 = vld [vmem:[%s6226_s7 + $0x88] sm:$0xff]  }
 0x10b   : > { %4038 = vmatpush3.bf16.msra.mxu0 %v4658_v18  ;;  %v5674_v52 = vsel %vm1634_vm2, %v1652_v35, %v1654_v43  ;;  %v1125_v18 = vrot.slane %v5501_v30, 3  ;;  %v4671_v30 = vld [vmem:[%s6224_s5 + $0x18] sm:$0xff]  }
 0x10c   : > { %3988 = vmatpush3.bf16.msra.mxu1 %v4647_v50  ;;  %v5669_v50 = vsel %vm1634_vm2, %v1650_v29, %v1652_v35  ;;  %4039 = vmatprep.subr.bf16.mxu0 %v4660_v27  ;;  %v4670_v27 = vld [vmem:[%s6224_s5 + $0x58] sm:$0xff]   ;;  %v1127_v29 = vrot.slane %v5504_v31, 3 }
 0x10d   : > { %3989 = vmatprep.subr.bf16.mxu1 %v4648_v55  ;;  %v1673_v55 = vpack.c.bf16 %v5674_v52, %v5669_v50  ;;  %v1126_v31 = vsel %vm1119_vm3, %v1123_v4, %v1125_v18  ;;  %v4677_v4 = vld [vmem:[%s6224_s5 + $0x28] sm:$0xff]   ;;  %v4724_v50 = vld [vmem:[%s6226_s7 + $0xd0] sm:$0xff]  }
 0x10e   : > { %v1128_v35 = vsel %vm1119_vm3, %v1125_v18, %v1127_v29  ;;  %v1135_v18 = vrot.slane %v5555_v3, 3  ;;  %v4687_v3 = vld [vmem:[%s6224_s5 + $0x98] sm:$0xff]   ;;  %v4725_v52 = vld [vmem:[%s6226_s7 + $0x90] sm:$0xff]  }
 0x10f   : > { %950 = vmatmul.mubr.bf16.gmra.mrb[12].mxu0 %v5627_v6 }
 0x110   : > { %3990 = vmatpush3.bf16.msra.mxu1 %v4650_v7  ;;  %957 = vmatprep.mubr.bf16.mxu0 %v5635_v13  ;;  %v1122_v7 = vsel %vm1119_vm3, %v1120_v60, %v1121_v63  ;;  %v1129_v60 = vrot.slane %v5538_v57, 3  ;;  %v1131_v63 = vrot.slane %v5541_v58, 3  ;;  %v4679_v57 = vld [vmem:[%s6224_s5 + $0x88] sm:$0xff]  }
 0x111   : > { %3991 = vmatprep.subr.bf16.mxu1 %v4652_v12  ;;  %4040 = vmatpush3.bf16.msra.mxu0 %v4661_v45  ;;  %v5709_v12 = vpack.c.bf16 %v5583_v26, %v5583_v26  ;;  %v5715_v21 = vpack.c.bf16 %v1124_v11, %v1122_v7  ;;  %v4673_v45 = vld [vmem:[%s6224_s5 + $0x20] sm:$0xff]   ;;  %v1133_v11 = vrot.slane %v5552_v2, 3  ;;  %v4685_v2 = vld [vmem:[%s6224_s5 + $0x38] sm:$0xff]  }
 0x112   : > { %4041 = vmatprep.subr.bf16.mxu0 %v4664_v51  ;;  %v5739_v51 = vpack.c.bf16 %v1128_v35, %v1126_v31  ;;  %v1130_v58 = vsel %vm1119_vm3, %v1127_v29, %v1129_v60  ;;  %v4686_v29 = vld [vmem:[%s6224_s5 + $0xd8] sm:$0xff]   ;;  %v4688_v31 = vld [vmem:[%s6224_s5 + $0xe0] sm:$0xff]  }
 0x113   : > { %v4689_v35 = vld [vmem:[%s6224_s5 + $0x100] sm:$0xff]  }
 0x114   : > { %3992 = vmatpush3.bf16.msra.mxu1 %v4654_v32  ;;  %v4674_v32 = vld [vmem:[%s6224_s5 + $0xc0] sm:$0xff]  }
 0x115   : > { %4081 = vmatprep.subr.bf16.mxu1 %v4657_v36  ;;  %4042 = vmatpush3.bf16.msra.mxu0 %v4665_v0  ;;  %v4672_v36 = vld [vmem:[%s6224_s5 + $0x60] sm:$0xff]   ;;  %v4678_v0 = vld [vmem:[%s6224_s5 + $0xc8] sm:$0xff]  }
 0x116   : > { %4043 = vmatprep.subr.bf16.mxu0 %v4666_v47  ;;  %v1132_v47 = vsel %vm1119_vm3, %v1129_v60, %v1131_v63  ;;  %v4690_v60 = vld [vmem:[%s6224_s5 + $0xa0] sm:$0xff]  }
 0x117   : > { %958 = vmatmul.mubr.bf16.gmra.mrb[16].mxu0 %v5678_v53  ;;  %1454 = vmatmul.mubr.bf16.vlgmr.msra.gmra.mrb[12].mxu1 %v5529_v48  ;;  %v5773_v7 = vpack.c.bf16 %v1132_v47, %v1130_v58  ;;  %v4696_v47 = vld [vmem:[%s6224_s5 + $0xf8] sm:$0xff]  }
 0x118   : > { %4082 = vmatpush3.bf16.msra.mxu1 %v4659_v56  ;;  %965 = vmatprep.mubr.bf16.mxu0 %v5687_v59  ;;  %v4675_v56 = vld [vmem:[%s6224_s5 + $0x80] sm:$0xff]  }
 0x119   : > { %4083 = vmatprep.subr.bf16.mxu1 %v4662_v61  ;;  %1461 = vmatprep.mubr.bf16.mxu1 %v5535_v54  ;;  %v4676_v61 = vld [vmem:[%s6224_s5 + $0x68] sm:$0xff]  }
 0x11a   : > { %4044 = vmatpush3.bf16.msra.mxu0 %v4668_v25  ;;  %v4681_v25 = vld [vmem:[%s6224_s5 + $0x30] sm:$0xff]  }
 0x11b   : > { %4133 = vmatprep.subr.bf16.mxu0 %v4674_v32  ;;  %v1134_v32 = vsel %vm1119_vm3, %v1131_v63, %v1133_v11 }
 0x11c   : > { %4084 = vmatpush3.bf16.msra.mxu1 %v4663_v23  ;;  %v4680_v23 = vld [vmem:[%s6224_s5 + $0x70] sm:$0xff]  }
 0x11d   : > { %4085 = vmatprep.subr.bf16.mxu1 %v4667_v24  ;;  %v4682_v24 = vld [vmem:[%s6224_s5 + $0xd0] sm:$0xff]  }
 0x11f   : > { %966 = vmatmul.mubr.bf16.gmra.mrb[20].mxu0 %v5709_v12  ;;  %1462 = vmatmul.mubr.bf16.gmra.mrb[16].mxu1 %v5565_v9 }
 0x120   : > { %4086 = vmatpush3.bf16.msra.mxu1 %v4669_v16  ;;  %1469 = vmatprep.mubr.bf16.mxu1 %v5571_v15  ;;  %v4683_v16 = vld [vmem:[%s6224_s5 + $0x90] sm:$0xff]  }
 0x121   : > { %1533 = vmatprep.mubr.bf16.mxu0 %v5715_v21  ;;  %4087 = vmatprep.subr.bf16.mxu1 %v4670_v27  ;;  %v4684_v27 = vld [vmem:[%s6224_s5 + $0x78] sm:$0xff]  }
 0x124   : > { %4088 = vmatpush3.bf16.msra.mxu1 %v4671_v30  ;;  %v1136_v30 = vsel %vm1119_vm3, %v1133_v11, %v1135_v18  ;;  %v4697_v11 = vld [vmem:[%s6224_s5 + $0x110] sm:$0xff]  }
 0x125   : > { %4089 = vmatprep.subr.bf16.mxu1 %v4672_v36  ;;  %v5804_v36 = vpack.c.bf16 %v1136_v30, %v1134_v32  ;;  %v6000_v32 = vld [vmem:[%s6221_s2] ss:$0 sm:$0xff] }
 0x127   : > { %1470 = vmatmul.mubr.bf16.gmra.mrb[20].mxu1 %v5594_v37  ;;  %1534 = vmatmul.mubr.bf16.vlgmr.msra.gmra.mrb[24].mxu0 %v5519_v42 }
 0x128   : > { %1477 = vmatprep.mubr.bf16.mxu1 %v5600_v44  ;;  %1541 = vmatprep.mubr.bf16.mxu0 %v5739_v51 }
 0x129   : > { %4090 = vmatpush3.bf16.msra.mxu1 %v4673_v45  ;;  %4134 = vmatpush3.bf16.msra.mxu0 %v4675_v56  ;;  %v1137_v45 = vrot.slane %v5580_v22, 3  ;;  %v1139_v56 = vrot.slane %v5583_v26, 3  ;;  %v4712_v26 = vld [vmem:[%s6226_s7 + $0x60] sm:$0xff]  }
 0x12a   : > { %4091 = vmatprep.subr.bf16.mxu1 %v4676_v61  ;;  %4135 = vmatprep.subr.bf16.mxu0 %v4678_v0  ;;  %v4691_v61 = vld [vmem:[%s6224_s5 + $0xe8] sm:$0xff]  }
 0x12b   : > { %v1138_v22 = vsel %vm1119_vm3, %v1135_v18, %v1137_v45  ;;  %v1140_v63 = vsel %vm1119_vm3, %v1137_v45, %v1139_v56  ;;  %v4692_v0 = vld [vmem:[%s6224_s5 + $0xa8] sm:$0xff]   ;;  %v4734_v18 = vld [vmem:[%s6226_s7 + $0xf8] sm:$0xff]  }
 0x12c   : > { %v1156_v58 = vpack.c.bf16 %v1140_v63, %v1138_v22 }
 0x12d   : > { %4092 = vmatpush3.bf16.msra.mxu1 %v4677_v4  ;;  %4136 = vmatpush3.bf16.msra.mxu0 %v4679_v57  ;;  %v4694_v4 = vld [vmem:[%s6224_s5 + $0xf0] sm:$0xff]  }
 0x12e   : > { %4093 = vmatprep.subr.bf16.mxu1 %v4680_v23  ;;  %4137 = vmatprep.subr.bf16.mxu0 %v4682_v24  ;;  %v4695_v57 = vld [vmem:[%s6224_s5 + $0xb0] sm:$0xff]   ;;  %v4698_v23 = vld [vmem:[%s6224_s5 + $0xb8] sm:$0xff]   ;;  %v4693_v24 = vld [vmem:[%s6224_s5 + $0x108] sm:$0xff]  }
 0x12f   : > { %1478 = vmatmul.mubr.bf16.gmra.mrb[24].mxu1 %v5627_v6  ;;  %1542 = vmatmul.mubr.bf16.gmra.mrb[28].mxu0 %v5531_v49 }
 0x130   : > { %1485 = vmatprep.mubr.bf16.mxu1 %v5635_v13  ;;  %1549 = vmatprep.mubr.bf16.mxu0 %v5773_v7 }
 0x131   : > { %4094 = vmatpush3.bf16.msra.mxu1 %v4681_v25  ;;  %4138 = vmatpush3.bf16.msra.mxu0 %v4683_v16  ;;  %v1157_v25 = vpack.c.bf16 %v1139_v56, %v1139_v56  ;;  %v4733_v16 = vld [vmem:[%s6226_s7 + $0xb0] sm:$0xff]  }
 0x132   : > { %4095 = vmatprep.subr.bf16.mxu1 %v4684_v27  ;;  %4139 = vmatprep.subr.bf16.mxu0 %v4686_v29  ;;  %v4735_v27 = vld [vmem:[%s6226_s7 + $0xb8] sm:$0xff]  }
 0x135   : > { %4096 = vmatpush3.bf16.msra.mxu1 %v4685_v2  ;;  %4140 = vmatpush3.bf16.msra.mxu0 %v4687_v3 }
 0x136   : > { %4141 = vmatprep.subr.bf16.mxu0 %v4688_v31  ;;  %4377 = vmatprep.subr.bf16.mxu1 %v4689_v35 }
 0x137   : > { %1486 = vmatmul.mubr.bf16.gmra.mrb[28].mxu1 %v5678_v53  ;;  %1550 = vmatmul.mubr.bf16.gmra.mrb[32].mxu0 %v5558_v5 }
 0x138   : > { %1493 = vmatprep.mubr.bf16.mxu1 %v5687_v59  ;;  %1557 = vmatprep.mubr.bf16.mxu0 %v5804_v36 }
 0x139   : > { %4142 = vmatpush3.bf16.msra.mxu0 %v4690_v60 }
 0x13a   : > { %4143 = vmatprep.subr.bf16.mxu0 %v4691_v61 }
 0x13d   : > { %4144 = vmatpush3.bf16.msra.mxu0 %v4692_v0 }
 0x13e   : > { %4145 = vmatprep.subr.bf16.mxu0 %v4694_v4 }
 0x13f   : > { %1494 = vmatmul.mubr.bf16.gmra.mrb[32].mxu1 %v5709_v12  ;;  %1558 = vmatmul.mubr.bf16.gmra.mrb[36].mxu0 %v5574_v17 }
 0x140   : > { %1565 = vmatprep.mubr.bf16.mxu0 %v1156_v58  ;;  %2034 = vmatprep.mubr.bf16.mxu1 %v5515_v39  ;;  %v4699_v39 = vld [vmem:[%s6224_s5 + $0x118] sm:$0xff]  }
 0x141   : > { %4146 = vmatpush3.bf16.msra.mxu0 %v4695_v57 }
 0x142   : > { %4147 = vmatprep.subr.bf16.mxu0 %v4696_v47 }
 0x145   : > { %4148 = vmatpush3.bf16.msra.mxu0 %v4698_v23 }
 0x147   : > { %1566 = vmatmul.mubr.bf16.gmra.mrb[40].mxu0 %v5596_v38  ;;  %2035 = vmatmul.mubr.bf16.vlgmr.msra.gmra.mrb[36].mxu1 %v5529_v48  ;;  %v4700_v48 = vld [vmem:[%s6224_s5 + $0x120] sm:$0xff]  }
 0x148   : > { %4378 = vmatpush3.bf16.msra.mxu1 %v4689_v35  ;;  %1573 = vmatprep.mubr.bf16.mxu0 %v1157_v25 }
 0x149   : > { %4379 = vmatprep.subr.bf16.mxu1 %v4693_v24  ;;  %2042 = vmatprep.mubr.bf16.mxu1 %v5535_v54  ;;  %v4701_v54 = vld [vmem:[%s6224_s5 + $0x128] sm:$0xff]  }
 0x14c   : > { %4380 = vmatpush3.bf16.msra.mxu1 %v4693_v24 }
 0x14d   : > { %4381 = vmatprep.subr.bf16.mxu1 %v4697_v11 }
 0x14f   : > { %1574 = vmatmul.mubr.bf16.gmra.mrb[44].mxu0 %v5598_v40  ;;  %2043 = vmatmul.mubr.bf16.gmra.mrb[40].mxu1 %v5565_v9  ;;  %v4702_v9 = vld [vmem:[%s6224_s5 + $0x130] sm:$0xff]  }
 0x150   : > { %4382 = vmatpush3.bf16.msra.mxu1 %v4697_v11  ;;  %2050 = vmatprep.mubr.bf16.mxu1 %v5571_v15  ;;  %v4703_v15 = vld [vmem:[%s6224_s5 + $0x138] sm:$0xff]  }
 0x151   : > { %2114 = vmatprep.mubr.bf16.mxu0 %v5715_v21  ;;  %4383 = vmatprep.subr.bf16.mxu1 %v4699_v39  ;;  %v4730_v21 = vld [vmem:[%s6226_s7 + $0xe8] sm:$0xff]  }
 0x154   : > { %4384 = vmatpush3.bf16.msra.mxu1 %v4699_v39 }
 0x155   : > { %4385 = vmatprep.subr.bf16.mxu1 %v4700_v48 }
 0x157   : > { %2051 = vmatmul.mubr.bf16.gmra.mrb[44].mxu1 %v5594_v37  ;;  %2115 = vmatmul.mubr.bf16.vlgmr.msra.gmra.mrb[48].mxu0 %v5519_v42  ;;  %v598_v42 = vld [vmem:[%s5476_s29 + $0x58] sm:$0xff] }
 0x158   : > { %2058 = vmatprep.mubr.bf16.mxu1 %v5600_v44  ;;  %2122 = vmatprep.mubr.bf16.mxu0 %v5739_v51  ;;  %v1656_v37 = vrot.slane %v598_v42, 4  ;;  %v4708_v44 = vld [vmem:[%s6226_s7 + $0x50] sm:$0xff]   ;;  %v4731_v51 = vld [vmem:[%s6226_s7 + $0xa8] sm:$0xff]  }
 0x159   : > { %4386 = vmatpush3.bf16.msra.mxu1 %v4700_v48 }
 0x15a   : > { %4387 = vmatprep.subr.bf16.mxu1 %v4701_v54  ;;  %v1657_v62 = vsel %vm1634_vm2, %v1654_v43, %v1656_v37  ;;  %v4722_v43 = vld [vmem:[%s6226_s7 + $0x78] sm:$0xff]  }
 0x15b   : > { %v1674_v1 = vpack.c.bf16 %v1657_v62, %v1657_v62 }
 0x15d   : > { %4388 = vmatpush3.bf16.msra.mxu1 %v4701_v54 }
 0x15e   : > { %4389 = vmatprep.subr.bf16.mxu1 %v4702_v9 }
 0x15f   : > { %2059 = vmatmul.mubr.bf16.gmra.mrb[48].mxu1 %v5627_v6  ;;  %2123 = vmatmul.mubr.bf16.gmra.mrb[52].mxu0 %v5531_v49  ;;  %v4704_v49 = vld [vmem:[%s6226_s7 + $0x40] sm:$0xff]   ;;  %v4710_v6 = vld [vmem:[%s6226_s7 + $0x58] sm:$0xff]  }
 0x160   : > { %2066 = vmatprep.mubr.bf16.mxu1 %v5635_v13  ;;  %2130 = vmatprep.mubr.bf16.mxu0 %v5773_v7  ;;  %v4714_v13 = vld [vmem:[%s6226_s7 + $0x68] sm:$0xff]   ;;  %v4732_v7 = vld [vmem:[%s6226_s7 + $0xf0] sm:$0xff]  }
 0x161   : > { %4390 = vmatpush3.bf16.msra.mxu1 %v4702_v9  ;;  %4199 = vmatprep.subr.bf16.mxu0 %v4704_v49 }
 0x162   : > { %4391 = vmatprep.subr.bf16.mxu1 %v4703_v15 }
 0x165   : > { %4392 = vmatpush3.bf16.msra.mxu1 %v4703_v15 }
 0x167   : > { %2067 = vmatmul.mubr.bf16.gmra.mrb[52].mxu1 %v5678_v53  ;;  %2131 = vmatmul.mubr.bf16.gmra.mrb[56].mxu0 %v5558_v5  ;;  %v4705_v5 = vld [vmem:[%s6226_s7] sm:$0xff]   ;;  %v4726_v53 = vld [vmem:[%s6226_s7 + $0xd8] sm:$0xff]  }
 0x168   : > { %2074 = vmatprep.mubr.bf16.mxu1 %v5687_v59  ;;  %2138 = vmatprep.mubr.bf16.mxu0 %v5804_v36  ;;  %v4728_v59 = vld [vmem:[%s6226_s7 + $0xe0] sm:$0xff]  }
 0x169   : > { %4200 = vmatpush3.bf16.msra.mxu0 %v4705_v5 }
 0x16f   : > { %2075 = vmatmul.mubr.bf16.gmra.mrb[56].mxu1 %v5709_v12  ;;  %2139 = vmatmul.mubr.bf16.gmra.mrb[60].mxu0 %v5574_v17  ;;  %v4706_v17 = vld [vmem:[%s6226_s7 + $0x48] sm:$0xff]   ;;  %v4729_v12 = vld [vmem:[%s6226_s7 + $0xa0] sm:$0xff]  }
 0x170   : > { %2146 = vmatprep.mubr.bf16.mxu0 %v1156_v58  ;;  %4393 = vmatprep.mubr.bf16.mxu1 %v1669_v8  ;;  %v4711_v8 = vld [vmem:[%s6226_s7 + $0x18] sm:$0xff]  }
 0x171   : > { %4201 = vmatprep.subr.bf16.mxu0 %v4706_v17 }
 0x177   : > { %2147 = vmatmul.mubr.bf16.gmra.mrb[64].mxu0 %v5596_v38  ;;  %4394 = vmatmul.mubr.bf16.vlgmr.msra.gmra.mrb[60].mxu1 %v1670_v19  ;;  %v4707_v38 = vld [vmem:[%s6226_s7 + $0x8] sm:$0xff]   ;;  %v4716_v19 = vld [vmem:[%s6226_s7 + $0xc0] sm:$0xff]  }
 0x178   : > { %2154 = vmatprep.mubr.bf16.mxu0 %v1157_v25  ;;  %4397 = vmatprep.mubr.bf16.mxu1 %v1671_v33  ;;  %v4719_v33 = vld [vmem:[%s6226_s7 + $0x30] sm:$0xff]  }
 0x179   : > { %4202 = vmatpush3.bf16.msra.mxu0 %v4707_v38  ;;  %4233 = vmatprep.subr.bf16.mxu1 %v4716_v19 }
 0x17a   : > { %4203 = vmatprep.subr.bf16.mxu0 %v4708_v44  ;;  %4234 = vmatpush3.bf16.msra.mxu1 %v4717_v20 }
 0x17b   : > { %4235 = vmatprep.subr.bf16.mxu1 %v4720_v34 }
 0x17e   : > { %4236 = vmatpush3.bf16.msra.mxu1 %v4721_v41 }
 0x17f   : > { %2155 = vmatmul.mubr.bf16.gmra.mrb[68].mxu0 %v5598_v40  ;;  %4398 = vmatmul.mubr.bf16.gmra.mrb[64].mxu1 %v1672_v46  ;;  %v4709_v40 = vld [vmem:[%s6226_s7 + $0x10] sm:$0xff]   ;;  %v4723_v46 = vld [vmem:[%s6226_s7 + $0x38] sm:$0xff]  }
 0x180   : > { %4401 = vmatprep.mubr.bf16.mxu1 %v1673_v55  ;;  %4204 = vmatpush3.bf16.msra.mxu0 %v4709_v40  ;;  %v4727_v55 = vld [vmem:[%s6226_s7 + $0x98] sm:$0xff]  }
 0x181   : > { %4205 = vmatprep.subr.bf16.mxu0 %v4710_v6  ;;  %4237 = vmatprep.subr.bf16.mxu1 %v4724_v50 }
 0x182   : > { %4238 = vmatpush3.bf16.msra.mxu1 %v4725_v52 }
 0x183   : > { %4239 = vmatprep.subr.bf16.mxu1 %v4726_v53 }
 0x184   : > { %4206 = vmatpush3.bf16.msra.mxu0 %v4711_v8 }
 0x185   : > { %4207 = vmatprep.subr.bf16.mxu0 %v4712_v26 }
 0x186   : > { %4240 = vmatpush3.bf16.msra.mxu1 %v4727_v55 }
 0x187   : > { %4402 = vmatmul.mubr.bf16.gmra.mrb[68].mxu1 %v1674_v1  ;;  %4241 = vmatprep.subr.bf16.mxu1 %v4728_v59 }
 0x188   : > { %4208 = vmatpush3.bf16.msra.mxu0 %v4713_v10 }
 0x189   : > { %4209 = vmatprep.subr.bf16.mxu0 %v4714_v13 }
 0x18a   : > { %4242 = vmatpush3.bf16.msra.mxu1 %v4729_v12 }
 0x18b   : > { %4243 = vmatprep.subr.bf16.mxu1 %v4730_v21 }
 0x18c   : > { %4210 = vmatpush3.bf16.msra.mxu0 %v4715_v14 }
 0x18d   : > { %4211 = vmatprep.subr.bf16.mxu0 %v4718_v28 }
 0x18e   : > { %4244 = vmatpush3.bf16.msra.mxu1 %v4731_v51 }
 0x18f   : > { %4245 = vmatprep.subr.bf16.mxu1 %v4732_v7 }
 0x190   : > { %4212 = vmatpush3.bf16.msra.mxu0 %v4719_v33 }
 0x191   : > { %4213 = vmatprep.subr.bf16.mxu0 %v4722_v43  ;;  %v5085_v43 = vmov 0.0  }
 0x192   : > { %4246 = vmatpush3.bf16.msra.mxu1 %v4733_v16 }
 0x193   : > { %4247 = vmatprep.subr.bf16.mxu1 %v4734_v18 }
 0x194   : > { %4214 = vmatpush3.bf16.msra.mxu0 %v4723_v46 }
 0x195   : > { %4405 = vmatprep.subr.bf16.mxu0 %v5085_v43 }
 0x196   : > { %4248 = vmatpush3.bf16.msra.mxu1 %v4735_v27 }
 0x1ca   : > { %v3927_v29 = vpop.f32.mrb[0].mxu0  ;;  %v4367_v2 = vpop.f32.mrb[0].mxu1 }
 0x1cb   : > { %v3928_v3 = vpop.f32.mrb[1].mxu0  ;;  %v1007_v30 = vpop.f32.mrb[1].mxu1 }
 0x1cc   : > { %v3929_v31 = vadd.f32 %v3928_v3, %v3927_v29  ;;  %v3930_v35 = vpop.f32.mrb[2].mxu0  ;;  %v4368_v36 = vpop.f32.mrb[2].mxu1 }
 0x1cd   : > { %v3931_v45 = vpop.f32.mrb[3].mxu0  ;;  %v1010_v56 = vpop.f32.mrb[3].mxu1 }
 0x1ce   : > { %v928_v60 = vadd.f32 %v3929_v31, %v6000_v32  ;;  %v3932_v61 = vadd.f32 %v3931_v45, %v3930_v35 }
 0x1d0   : > { %v1008_v22 = vadd.f32 %v1007_v30, %v928_v60  ;;  %v931_v63 = vadd.f32 %v3932_v61, %v6000_v32 }
 0x1d2   : > { %v1053_v0 = vmax.f32 %v1008_v22, 0.0  ;;  %v1011_v4 = vadd.f32 %v1010_v56, %v931_v63  ;;  %v3933_v57 = vpop.f32.mrb[4].mxu0  ;;  %v4371_v58 = vpop.f32.mrb[4].mxu1 }
 0x1d3   : > { %v3934_v47 = vpop.f32.mrb[5].mxu0  ;;  %v1023_v23 = vpop.f32.mrb[5].mxu1 }
 0x1d4   : > { %1064 = vst [vmem:[#allocation2] sm:$0xff] %v1053_v0  ;;  %v1054_v24 = vmax.f32 %v1011_v4, 0.0  ;;  %v3935_v25 = vadd.f32 %v3934_v47, %v3933_v57  ;;  %v3936_v11 = vpop.f32.mrb[6].mxu0  ;;  %v4372_v39 = vpop.f32.mrb[6].mxu1 }
 0x1d5   : > { %v3937_v48 = vpop.f32.mrb[7].mxu0  ;;  %v1026_v54 = vpop.f32.mrb[7].mxu1 }
 0x1d6   : > { %1065 = vst [vmem:[#allocation2 + $0x8] sm:$0xff] %v1054_v24  ;;  %v936_v9 = vadd.f32 %v3935_v25, %v6000_v32  ;;  %v3938_v15 = vadd.f32 %v3937_v48, %v3936_v11 }
 0x1d8   : > { %v1016_v42 = vadd.f32 %v4367_v2, %v936_v9  ;;  %v939_v49 = vadd.f32 %v3938_v15, %v6000_v32 }
 0x1da   : > { %v1055_v5 = vmax.f32 %v1016_v42, 0.0  ;;  %v1019_v17 = vadd.f32 %v4368_v36, %v939_v49  ;;  %v3939_v37 = vpop.f32.mrb[8].mxu0  ;;  %v6006_v38 = vpop.f32.mrb[8].mxu1 }
 0x1db   : > { %v3940_v44 = vpop.f32.mrb[9].mxu0  ;;  %v1039_v62 = vpop.f32.mrb[9].mxu1 }
 0x1dc   : > { %1066 = vst [vmem:[#allocation2 + $0x10] sm:$0xff] %v1055_v5  ;;  %v1056_v40 = vmax.f32 %v1019_v17, 0.0  ;;  %v3941_v1 = vadd.f32 %v3940_v44, %v3939_v37  ;;  %v3942_v6 = vpop.f32.mrb[10].mxu0  ;;  %v4376_v8 = vpop.f32.mrb[10].mxu1 }
 0x1dd   : > { %v3943_v26 = vpop.f32.mrb[11].mxu0  ;;  %v1042_v10 = vpop.f32.mrb[11].mxu1 }
 0x1de   : > { %1067 = vst [vmem:[#allocation2 + $0x18] sm:$0xff] %v1056_v40  ;;  %v944_v13 = vadd.f32 %v3941_v1, %v6000_v32  ;;  %v3944_v14 = vadd.f32 %v3943_v26, %v3942_v6  ;;  %v6023_v26 = vld [vmem:[%s6223_s4] ss:$0 sm:$0xff] }
 0x1e0   : > { %v1024_v19 = vadd.f32 %v1023_v23, %v944_v13  ;;  %v947_v20 = vadd.f32 %v3944_v14, %v6000_v32 }
 0x1e2   : > { %v1057_v28 = vmax.f32 %v1024_v19, 0.0  ;;  %v1027_v33 = vadd.f32 %v1026_v54, %v947_v20  ;;  %v3945_v34 = vpop.f32.mrb[12].mxu0 }
 0x1e3   : > { %v3946_v41 = vpop.f32.mrb[13].mxu0 }
 0x1e4   : > { %1068 = vst [vmem:[#allocation2 + $0x20] sm:$0xff] %v1057_v28  ;;  %v1058_v46 = vmax.f32 %v1027_v33, 0.0  ;;  %v3947_v50 = vadd.f32 %v3946_v41, %v3945_v34  ;;  %v3948_v52 = vpop.f32.mrb[14].mxu0 }
 0x1e5   : > { %v3949_v53 = vpop.f32.mrb[15].mxu0 }
 0x1e6   : > { %1069 = vst [vmem:[#allocation2 + $0x28] sm:$0xff] %v1058_v46  ;;  %v952_v55 = vadd.f32 %v3947_v50, %v6000_v32  ;;  %v3950_v59 = vadd.f32 %v3949_v53, %v3948_v52 }
 0x1e8   : > { %v1032_v12 = vadd.f32 %v4371_v58, %v952_v55  ;;  %v955_v21 = vadd.f32 %v3950_v59, %v6000_v32 }
 0x1ea   : > { %v1059_v51 = vmax.f32 %v1032_v12, 0.0  ;;  %v1035_v7 = vadd.f32 %v4372_v39, %v955_v21  ;;  %v3951_v16 = vpop.f32.mrb[16].mxu0  ;;  %v3993_v18 = vpop.f32.mrb[12].mxu1 }
 0x1eb   : > { %v1075_v27 = vld [vmem:[#allocation2] ss:$5 sm:$0xff]  ;;  %v1081_v29 = vld [vmem:[#allocation2 + $0x1] ss:$5 sm:$0xff]  ;;  %v3952_v3 = vpop.f32.mrb[17].mxu0  ;;  %v3994_v36 = vpop.f32.mrb[13].mxu1 }
 0x1ec   : > { %1070 = vst [vmem:[#allocation2 + $0x30] sm:$0xff] %v1059_v51  ;;  %v1060_v2 = vmax.f32 %v1035_v7, 0.0  ;;  %v1086_v30 = vmax.f32 %v1075_v27, %v1081_v29  ;;  %v1090_v31 = vld [vmem:[#allocation2 + $0x2] ss:$5 sm:$0xff]  ;;  %v3953_v35 = vadd.f32 %v3952_v3, %v3951_v16  ;;  %v3954_v45 = vpop.f32.mrb[18].mxu0  ;;  %v3995_v56 = vadd.f32 %v3994_v36, %v3993_v18  ;;  %v3996_v60 = vpop.f32.mrb[14].mxu1 }
 0x1ed   : > { %v3955_v61 = vpop.f32.mrb[19].mxu0  ;;  %v1099_v63 = vld [vmem:[#allocation2 + $0x3] ss:$5 sm:$0xff]  ;;  %v3997_v57 = vpop.f32.mrb[15].mxu1  ;;  %v1108_v23 = vld [vmem:[#allocation2 + $0x4] ss:$5 sm:$0xff] }
 0x1ee   : > { %1071 = vst [vmem:[#allocation2 + $0x38] sm:$0xff] %v1060_v2  ;;  %v1095_v22 = vmax.f32 %v1086_v30, %v1090_v31  ;;  %v960_v0 = vadd.f32 %v3953_v35, %v6000_v32  ;;  %v3956_v4 = vadd.f32 %v3955_v61, %v3954_v45  ;;  %v3998_v58 = vadd.f32 %v3997_v57, %v3996_v60 }
 0x1ef   : > { %v1456_v28 = vadd.f32 %v3995_v56, %v6023_v26 }
 0x1f0   : > { %v1104_v47 = vmax.f32 %v1095_v22, %v1099_v63  ;;  %v1040_v24 = vadd.f32 %v1039_v62, %v960_v0  ;;  %v963_v25 = vadd.f32 %v3956_v4, %v6000_v32  ;;  %v1459_v53 = vadd.f32 %v3998_v58, %v6023_v26 }
 0x1f2   : > { %v3957_v11 = vpop.f32.mrb[20].mxu0  ;;  %v3999_v39 = vpop.f32.mrb[16].mxu1  ;;  %v6015_v48 = vmax.f32 %v1104_v47, %v1108_v23  ;;  %v1061_v54 = vmax.f32 %v1040_v24, 0.0  ;;  %v1043_v9 = vadd.f32 %v1042_v10, %v963_v25 }
 0x1f3   : > { %v3958_v15 = vpop.f32.mrb[21].mxu0  ;;  %v4000_v42 = vpop.f32.mrb[17].mxu1 }
 0x1f4   : > { %v3959_v49 = vadd.f32 %v3958_v15, %v3957_v11  ;;  %v4001_v5 = vadd.f32 %v4000_v42, %v3999_v39  ;;  %v4002_v17 = vpop.f32.mrb[18].mxu1  ;;  %v3960_v37 = vpop.f32.mrb[22].mxu0  ;;  %1116 = vst [vmem:[#allocation3] sm:$0xff] %v6015_v48  ;;  %1072 = vst [vmem:[#allocation2 + $0x40] sm:$0xff] %v1061_v54  ;;  %v1062_v44 = vmax.f32 %v1043_v9, 0.0 }
 0x1f5   : > { %v4003_v40 = vpop.f32.mrb[19].mxu1  ;;  %v3961_v62 = vpop.f32.mrb[23].mxu0 }
 0x1f6   : > { %v968_v1 = vadd.f32 %v3959_v49, %v6000_v32  ;;  %v4004_v6 = vadd.f32 %v4003_v40, %v4002_v17  ;;  %1073 = vst [vmem:[#allocation2 + $0x48] sm:$0xff] %v1062_v44  ;;  %v1464_v0 = vadd.f32 %v4001_v5, %v6023_v26 }
 0x1f8   : > { %v1048_v8 = vadd.f32 %v6006_v38, %v968_v1  ;;  %v1467_v11 = vadd.f32 %v4004_v6, %v6023_v26 }
 0x1fa   : > { %v1063_v10 = vmax.f32 %v1048_v8, 0.0  ;;  %v4005_v13 = vpop.f32.mrb[20].mxu1  ;;  %v4045_v14 = vpop.f32.mrb[24].mxu0 }
 0x1fb   : > { %v4006_v19 = vpop.f32.mrb[21].mxu1  ;;  %v4046_v20 = vpop.f32.mrb[25].mxu0 }
 0x1fc   : > { %1074 = vst [vmem:[#allocation2 + $0x50] sm:$0x1f] %v1063_v10  ;;  %v4007_v33 = vadd.f32 %v4006_v19, %v4005_v13  ;;  %v4047_v34 = vadd.f32 %v4046_v20, %v4045_v14  ;;  %v4008_v32 = vpop.f32.mrb[22].mxu1  ;;  %v4048_v41 = vpop.f32.mrb[26].mxu0 }
 0x1fd   : > { %v4009_v46 = vpop.f32.mrb[23].mxu1  ;;  %v4049_v50 = vpop.f32.mrb[27].mxu0  ;;  %v1077_v38 = vld [vmem:[#allocation2 + $0x28] ss:$5 sm:$0xff]  ;;  %v1083_v52 = vld [vmem:[#allocation2 + $0x29] ss:$5 sm:$0xff] }
 0x1fe   : > { %v1536_v55 = vadd.f32 %v4047_v34, %v1456_v28  ;;  %v4010_v59 = vadd.f32 %v4009_v46, %v4008_v32  ;;  %v4050_v12 = vadd.f32 %v4049_v50, %v4048_v41  ;;  %v1087_v21 = vmax.f32 %v1077_v38, %v1083_v52  ;;  %v1092_v51 = vld [vmem:[#allocation2 + $0x2a] ss:$5 sm:$0xff]  ;;  %v1101_v27 = vld [vmem:[#allocation2 + $0x2b] ss:$5 sm:$0xff] }
 0x1ff   : > { %v1110_v36 = vld [vmem:[#allocation2 + $0x2c] ss:$5 sm:$0xff]  ;;  %v1472_v1 = vadd.f32 %v4007_v33, %v6023_v26 }
 0x200   : > { %v1581_v7 = vmax.f32 %v1536_v55, 0.0  ;;  %v1539_v16 = vadd.f32 %v4050_v12, %v1459_v53  ;;  %v1096_v18 = vmax.f32 %v1087_v21, %v1092_v51  ;;  %v1475_v28 = vadd.f32 %v4010_v59, %v6023_v26 }
 0x202   : > { %1592 = vst [vmem:[#allocation2] sm:$0xff] %v1581_v7  ;;  %v1582_v29 = vmax.f32 %v1539_v16, 0.0  ;;  %v4011_v2 = vpop.f32.mrb[24].mxu1  ;;  %v4051_v3 = vpop.f32.mrb[28].mxu0  ;;  %v1105_v35 = vmax.f32 %v1096_v18, %v1101_v27 }
 0x203   : > { %v1079_v30 = vld [vmem:[#allocation2 + $0x50] ss:$5 sm:$0x1]  ;;  %v1085_v31 = vld [vmem:[#allocation2 + $0x51] ss:$5 sm:$0x1] }
 0x204   : > { %v1088_v45 = vmax.f32 %v1079_v30, %v1085_v31  ;;  %1593 = vst [vmem:[#allocation2 + $0x8] sm:$0xff] %v1582_v29  ;;  %v1094_v56 = vld [vmem:[#allocation2 + $0x52] ss:$5 sm:$0x1]  ;;  %v4012_v60 = vpop.f32.mrb[25].mxu1  ;;  %v4052_v61 = vpop.f32.mrb[29].mxu0  ;;  %v6027_v22 = vmax.f32 %v1105_v35, %v1110_v36 }
 0x205   : > { %v4013_v4 = vadd.f32 %v4012_v60, %v4011_v2  ;;  %v4053_v57 = vadd.f32 %v4052_v61, %v4051_v3  ;;  %v4014_v58 = vpop.f32.mrb[26].mxu1  ;;  %v4054_v47 = vpop.f32.mrb[30].mxu0  ;;  %v1103_v25 = vld [vmem:[#allocation2 + $0x53] ss:$5 sm:$0x1]  ;;  %v4736_v3 = vld [vmem:[%s6226_s7 + $0x100] sm:$0xff]  }
 0x206   : > { %v1097_v63 = vmax.f32 %v1088_v45, %v1094_v56  ;;  %v4015_v23 = vpop.f32.mrb[27].mxu1  ;;  %v4055_v24 = vpop.f32.mrb[31].mxu0  ;;  %1117 = vst [vmem:[#allocation3 + $0x8] sm:$0xff] %v6027_v22  ;;  %v1112_v42 = vld [vmem:[#allocation2 + $0x54] ss:$5 sm:$0x1]  ;;  %v2324_v36 = vpack.c.bf16 %v6027_v22, %v6015_v48 }
 0x207   : > { %v1544_v39 = vadd.f32 %v4053_v57, %v1464_v0  ;;  %v4016_v54 = vadd.f32 %v4015_v23, %v4014_v58  ;;  %v4056_v9 = vadd.f32 %v4055_v24, %v4054_v47  ;;  %v1480_v12 = vadd.f32 %v4013_v4, %v6023_v26 }
 0x208   : > { %v1106_v15 = vmax.f32 %v1097_v63, %v1103_v25  ;;  %v4737_v63 = vld [vmem:[%s6226_s7 + $0x108] sm:$0xff]  }
 0x209   : > { %v1583_v49 = vmax.f32 %v1544_v39, 0.0  ;;  %v1547_v17 = vadd.f32 %v4056_v9, %v1467_v11  ;;  %v1483_v30 = vadd.f32 %v4016_v54, %v6023_v26 }
 0x20a   : > { %v4017_v37 = vpop.f32.mrb[28].mxu1  ;;  %v4057_v5 = vpop.f32.mrb[32].mxu0  ;;  %v1115_v62 = vmax.f32 %v1106_v15, %v1112_v42  ;;  %v4738_v42 = vld [vmem:[%s6226_s7 + $0x110] sm:$0xff]  }
 0x20b   : > { %v4018_v44 = vpop.f32.mrb[29].mxu1  ;;  %v4058_v40 = vpop.f32.mrb[33].mxu0  ;;  %1594 = vst [vmem:[#allocation2 + $0x10] sm:$0xff] %v1583_v49  ;;  %v1584_v8 = vmax.f32 %v1547_v17, 0.0 }
 0x20c   : > { %v4019_v10 = vadd.f32 %v4018_v44, %v4017_v37  ;;  %v4059_v13 = vadd.f32 %v4058_v40, %v4057_v5  ;;  %v4020_v14 = vpop.f32.mrb[30].mxu1  ;;  %v4060_v6 = vpop.f32.mrb[34].mxu0  ;;  %1118 = vst [vmem:[#allocation3 + $0x10] sm:$0x1] %v1115_v62 }
 0x20d   : > { %v4021_v19 = vpop.f32.mrb[31].mxu1  ;;  %v4061_v20 = vpop.f32.mrb[35].mxu0  ;;  %1595 = vst [vmem:[#allocation2 + $0x18] sm:$0xff] %v1584_v8  ;;  %v2300_v16 = vld [vmem:[#allocation3 + $0x1] sm:$0xff] }
 0x20e   : > { %v1552_v34 = vadd.f32 %v4059_v13, %v1472_v1  ;;  %v4022_v32 = vadd.f32 %v4021_v19, %v4020_v14  ;;  %v4062_v41 = vadd.f32 %v4061_v20, %v4060_v6  ;;  %v1488_v22 = vadd.f32 %v4019_v10, %v6023_v26  ;;  %v4739_v13 = vld [vmem:[%s6226_s7 + $0x118] sm:$0xff]  }
 0x210   : > { %v1585_v46 = vmax.f32 %v1552_v34, 0.0  ;;  %v1555_v50 = vadd.f32 %v4062_v41, %v1475_v28  ;;  %v1491_v49 = vadd.f32 %v4022_v32, %v6023_v26 }
 0x212   : > { %1596 = vst [vmem:[#allocation2 + $0x20] sm:$0xff] %v1585_v46  ;;  %v1586_v38 = vmax.f32 %v1555_v50, 0.0  ;;  %v4023_v33 = vpop.f32.mrb[32].mxu1  ;;  %v4063_v52 = vpop.f32.mrb[36].mxu0 }
 0x213   : > { %v4024_v53 = vpop.f32.mrb[33].mxu1  ;;  %v4064_v55 = vpop.f32.mrb[37].mxu0  ;;  %v2301_v18 = vld [vmem:[#allocation3 + $0x9] sm:$0xff] }
 0x214   : > { %1597 = vst [vmem:[#allocation2 + $0x28] sm:$0xff] %v1586_v38  ;;  %v6035_v21 = vadd.f32 %v4024_v53, %v4023_v33  ;;  %v4065_v51 = vadd.f32 %v4064_v55, %v4063_v52  ;;  %v4026_v7 = vpop.f32.mrb[34].mxu1  ;;  %v4066_v59 = vpop.f32.mrb[38].mxu0  ;;  %v2325_v2 = vpack.c.bf16 %v2301_v18, %v2300_v16  ;;  %v4740_v52 = vld [vmem:[%s6226_s7 + $0x120] sm:$0xff]  }
 0x215   : > { %v4027_v27 = vpop.f32.mrb[35].mxu1  ;;  %v4067_v29 = vpop.f32.mrb[39].mxu0  ;;  %v2306_v7 = vld [vmem:[#allocation3 + $0x2] sm:$0xff] }
 0x216   : > { %v1560_v31 = vadd.f32 %v4065_v51, %v1480_v12  ;;  %v4068_v35 = vadd.f32 %v4067_v29, %v4066_v59  ;;  %2698 = vmatprep.mubr.bf16.mxu0 %v2325_v2  ;;  %v1496_v34 = vadd.f32 %v6035_v21, %v6023_v26  ;;  %v2312_v51 = vld [vmem:[#allocation3 + $0x3] sm:$0xff]  ;;  %v4741_v26 = vld [vmem:[%s6226_s7 + $0x128] sm:$0xff]  }
 0x217   : > { %2699 = vmatmul.mubr.bf16.vlgmr.msra.gmra.mrb[72].mxu0 %v2324_v36  ;;  %v6076_v16 = vld [vmem:[%s6225_s6] ss:$0 sm:$0xff] }
 0x218   : > { %v1587_v45 = vmax.f32 %v1560_v31, 0.0  ;;  %v1563_v56 = vadd.f32 %v4068_v35, %v1483_v30  ;;  %4406 = vmatpush3.bf16.msra.mxu0 %v4736_v3 }
 0x219   : > { %v1603_v60 = vld [vmem:[#allocation2] ss:$5 sm:$0xff]  ;;  %v1606_v61 = vld [vmem:[#allocation2 + $0x1] ss:$5 sm:$0xff]  ;;  %4407 = vmatprep.subr.bf16.mxu0 %v5085_v43 }
 0x21a   : > { %1598 = vst [vmem:[#allocation2 + $0x30] sm:$0xff] %v1587_v45  ;;  %v1588_v0 = vmax.f32 %v1563_v56, 0.0  ;;  %v4069_v4 = vpop.f32.mrb[40].mxu0  ;;  %v1609_v57 = vmax.f32 %v1603_v60, %v1606_v61  ;;  %v1612_v58 = vld [vmem:[#allocation2 + $0x2] ss:$5 sm:$0xff]  ;;  %v4097_v47 = vpop.f32.mrb[36].mxu1 }
 0x21b   : > { %v4070_v48 = vpop.f32.mrb[41].mxu0  ;;  %v4098_v24 = vpop.f32.mrb[37].mxu1  ;;  %v1618_v39 = vld [vmem:[#allocation2 + $0x3] ss:$5 sm:$0xff]  ;;  %v1624_v40 = vld [vmem:[#allocation2 + $0x4] ss:$5 sm:$0xff] }
 0x21c   : > { %1599 = vst [vmem:[#allocation2 + $0x38] sm:$0xff] %v1588_v0  ;;  %v4071_v23 = vadd.f32 %v4070_v48, %v4069_v4  ;;  %v4072_v25 = vpop.f32.mrb[42].mxu0  ;;  %v1615_v11 = vmax.f32 %v1609_v57, %v1612_v58  ;;  %v6048_v54 = vadd.f32 %v4098_v24, %v4097_v47  ;;  %v4100_v9 = vpop.f32.mrb[38].mxu1  ;;  %4408 = vmatpush3.bf16.msra.mxu0 %v4737_v63  ;;  %v4742_v58 = vld [vmem:[%s6226_s7 + $0x130] sm:$0xff]  }
 0x21d   : > { %v4073_v15 = vpop.f32.mrb[43].mxu0  ;;  %v4101_v5 = vpop.f32.mrb[39].mxu1  ;;  %4409 = vmatprep.subr.bf16.mxu0 %v5085_v43 }
 0x21e   : > { %v1568_v17 = vadd.f32 %v4071_v23, %v1488_v22  ;;  %v4074_v37 = vadd.f32 %v4073_v15, %v4072_v25  ;;  %v1621_v44 = vmax.f32 %v1615_v11, %v1618_v39  ;;  %v4102_v62 = vadd.f32 %v4101_v5, %v4100_v9  ;;  %v4743_v9 = vld [vmem:[%s6226_s7 + $0x138] sm:$0xff]  }
 0x21f   : > { %v2037_v63 = vadd.f32 %v6048_v54, %v6076_v16 }
 0x220   : > { %v1589_v1 = vmax.f32 %v1568_v17, 0.0  ;;  %v1571_v8 = vadd.f32 %v4074_v37, %v1491_v49  ;;  %v6055_v10 = vmax.f32 %v1621_v44, %v1624_v40  ;;  %4410 = vmatpush3.bf16.msra.mxu0 %v4738_v42  ;;  %v2040_v47 = vadd.f32 %v4102_v62, %v6076_v16 }
 0x221   : > { %4411 = vmatprep.subr.bf16.mxu0 %v5085_v43 }
 0x222   : > { %1600 = vst [vmem:[#allocation2 + $0x40] sm:$0xff] %v1589_v1  ;;  %v1590_v14 = vmax.f32 %v1571_v8, 0.0  ;;  %v4075_v6 = vpop.f32.mrb[44].mxu0  ;;  %v4103_v19 = vpop.f32.mrb[40].mxu1  ;;  %1630 = vst [vmem:[#allocation3 + $0x11] sm:$0xff] %v6055_v10 }
 0x223   : > { %v4076_v20 = vpop.f32.mrb[45].mxu0  ;;  %v4104_v28 = vpop.f32.mrb[41].mxu1 }
 0x224   : > { %1601 = vst [vmem:[#allocation2 + $0x48] sm:$0xff] %v1590_v14  ;;  %v4077_v32 = vadd.f32 %v4076_v20, %v4075_v6  ;;  %v4105_v41 = vadd.f32 %v4104_v28, %v4103_v19  ;;  %v4106_v46 = vpop.f32.mrb[42].mxu1  ;;  %v4078_v50 = vpop.f32.mrb[46].mxu0  ;;  %4412 = vmatpush3.bf16.msra.mxu0 %v4739_v13 }
 0x225   : > { %v4107_v38 = vpop.f32.mrb[43].mxu1  ;;  %v4079_v33 = vpop.f32.mrb[47].mxu0  ;;  %4413 = vmatprep.subr.bf16.mxu0 %v5085_v43 }
 0x226   : > { %v1576_v53 = vadd.f32 %v4077_v32, %v1496_v34  ;;  %v6067_v55 = vadd.f32 %v4107_v38, %v4106_v46  ;;  %v2045_v44 = vadd.f32 %v4105_v41, %v6076_v16 }
 0x228   : > { %v1591_v12 = vmax.f32 %v1576_v53, 0.0  ;;  %4414 = vmatpush3.bf16.msra.mxu0 %v4740_v52  ;;  %v2048_v32 = vadd.f32 %v6067_v55, %v6076_v16 }
 0x229   : > { %v2313_v21 = vld [vmem:[#allocation3 + $0xb] sm:$0xff]  ;;  %4415 = vmatprep.subr.bf16.mxu0 %v5085_v43 }
 0x22a   : > { %v2307_v59 = vld [vmem:[#allocation3 + $0xa] sm:$0xff]  ;;  %1602 = vst [vmem:[#allocation2 + $0x50] sm:$0x1f] %v1591_v12  ;;  %v4109_v18 = vpop.f32.mrb[44].mxu1  ;;  %v4149_v27 = vpop.f32.mrb[48].mxu0  ;;  %v2327_v29 = vpack.c.bf16 %v2313_v21, %v2312_v51 }
 0x22b   : > { %v2326_v2 = vpack.c.bf16 %v2307_v59, %v2306_v7  ;;  %v4110_v3 = vpop.f32.mrb[45].mxu1  ;;  %v4150_v30 = vpop.f32.mrb[49].mxu0  ;;  %v1604_v31 = vld [vmem:[#allocation2 + $0x28] ss:$5 sm:$0xff]  ;;  %v1607_v35 = vld [vmem:[#allocation2 + $0x29] ss:$5 sm:$0xff] }
 0x22c   : > { %v6079_v36 = vadd.f32 %v4110_v3, %v4109_v18  ;;  %v4151_v45 = vadd.f32 %v4150_v30, %v4149_v27  ;;  %v4112_v56 = vpop.f32.mrb[46].mxu1  ;;  %v4152_v60 = vpop.f32.mrb[50].mxu0  ;;  %2755 = vmatprep.mubr.bf16.mxu1 %v2327_v29  ;;  %v1610_v61 = vmax.f32 %v1604_v31, %v1607_v35  ;;  %v1613_v57 = vld [vmem:[#allocation2 + $0x2a] ss:$5 sm:$0xff]  ;;  %4416 = vmatpush3.bf16.msra.mxu0 %v4741_v26  ;;  %v1619_v24 = vld [vmem:[#allocation2 + $0x2b] ss:$5 sm:$0xff] }
 0x22d   : > { %v4113_v0 = vpop.f32.mrb[47].mxu1  ;;  %v4153_v4 = vpop.f32.mrb[51].mxu0  ;;  %2756 = vmatmul.mubr.bf16.vlgmr.msra.gmra.mrb[72].mxu1 %v2326_v2  ;;  %4417 = vmatprep.subr.bf16.mxu0 %v5085_v43  ;;  %v1625_v39 = vld [vmem:[#allocation2 + $0x2c] ss:$5 sm:$0xff] }
 0x22e   : > { %v4114_v48 = vadd.f32 %v4113_v0, %v4112_v56  ;;  %v4154_v22 = vadd.f32 %v4153_v4, %v4152_v60  ;;  %v1616_v23 = vmax.f32 %v1610_v61, %v1613_v57  ;;  %v6088_v25 = vadd.f32 %v4151_v45, %v2037_v63  ;;  %v2296_v7 = vld [vmem:[#allocation3 + $0x10] sm:$0xff] }
 0x22f   : > { %v2053_v18 = vadd.f32 %v6079_v36, %v6076_v16 }
 0x230   : > { %v1622_v11 = vmax.f32 %v1616_v23, %v1619_v24  ;;  %v6090_v54 = vadd.f32 %v4154_v22, %v2040_v47  ;;  %4418 = vmatpush3.bf16.msra.mxu0 %v4742_v58  ;;  %v2056_v35 = vadd.f32 %v4114_v48, %v6076_v16 }
 0x231   : > { %v1605_v15 = vld [vmem:[#allocation2 + $0x50] ss:$5 sm:$0x1]  ;;  %v1608_v42 = vld [vmem:[#allocation2 + $0x51] ss:$5 sm:$0x1]  ;;  %4419 = vmatprep.subr.bf16.mxu0 %v5085_v43 }
 0x232   : > { %v4115_v49 = vpop.f32.mrb[48].mxu1  ;;  %v4155_v17 = vpop.f32.mrb[52].mxu0  ;;  %v1628_v37 = vmax.f32 %v1622_v11, %v1625_v39  ;;  %v1611_v5 = vmax.f32 %v1605_v15, %v1608_v42  ;;  %v1614_v1 = vld [vmem:[#allocation2 + $0x52] ss:$5 sm:$0x1] }
 0x233   : > { %v4116_v40 = vpop.f32.mrb[49].mxu1  ;;  %v4156_v62 = vpop.f32.mrb[53].mxu0  ;;  %v1620_v38 = vld [vmem:[#allocation2 + $0x53] ss:$5 sm:$0x1] }
 0x234   : > { %v4117_v8 = vadd.f32 %v4116_v40, %v4115_v49  ;;  %v4157_v13 = vadd.f32 %v4156_v62, %v4155_v17  ;;  %v4118_v14 = vpop.f32.mrb[50].mxu1  ;;  %v4158_v6 = vpop.f32.mrb[54].mxu0  ;;  %1631 = vst [vmem:[#allocation3 + $0x19] sm:$0xff] %v1628_v37  ;;  %v2330_v19 = vpack.c.bf16 %v1628_v37, %v6055_v10  ;;  %v1617_v20 = vmax.f32 %v1611_v5, %v1614_v1  ;;  %v1626_v53 = vld [vmem:[#allocation2 + $0x54] ss:$5 sm:$0x1] }
 0x235   : > { %v4119_v28 = vpop.f32.mrb[51].mxu1  ;;  %v4159_v34 = vpop.f32.mrb[55].mxu0  ;;  %4420 = vmatpush3.bf16.msra.mxu0 %v4743_v9 }
 0x236   : > { %v4120_v46 = vadd.f32 %v4119_v28, %v4118_v14  ;;  %v4160_v50 = vadd.f32 %v4159_v34, %v4158_v6  ;;  %2706 = vmatprep.mubr.bf16.mxu0 %v2330_v19  ;;  %v2125_v41 = vadd.f32 %v4157_v13, %v2045_v44  ;;  %v1623_v33 = vmax.f32 %v1617_v20, %v1620_v38 }
 0x237   : > { %v2061_v36 = vadd.f32 %v4117_v8, %v6076_v16 }
 0x238   : > { %v2128_v52 = vadd.f32 %v4160_v50, %v2048_v32  ;;  %v1629_v12 = vmax.f32 %v1623_v33, %v1626_v53  ;;  %v2064_v39 = vadd.f32 %v4120_v46, %v6076_v16 }
 0x23a   : > { %v4121_v51 = vpop.f32.mrb[52].mxu1  ;;  %v4161_v26 = vpop.f32.mrb[56].mxu0  ;;  %1632 = vst [vmem:[#allocation3 + $0x21] sm:$0x1] %v1629_v12 }
 0x23b   : > { %v4122_v21 = vpop.f32.mrb[53].mxu1  ;;  %v4162_v10 = vpop.f32.mrb[57].mxu0  ;;  %v2297_v59 = vld [vmem:[#allocation3 + $0x18] sm:$0xff] }
 0x23c   : > { %v4123_v55 = vadd.f32 %v4122_v21, %v4121_v51  ;;  %v4163_v27 = vadd.f32 %v4162_v10, %v4161_v26  ;;  %v4124_v29 = vpop.f32.mrb[54].mxu1  ;;  %v4164_v2 = vpop.f32.mrb[58].mxu0  ;;  %v2329_v3 = vpack.c.bf16 %v2297_v59, %v2296_v7 }
 0x23d   : > { %v4125_v30 = vpop.f32.mrb[55].mxu1  ;;  %v4165_v31 = vpop.f32.mrb[59].mxu0 }
 0x23e   : > { %v4126_v45 = vadd.f32 %v4125_v30, %v4124_v29  ;;  %v4166_v56 = vadd.f32 %v4165_v31, %v4164_v2  ;;  %2707 = vmatmul.mubr.bf16.gmra.mrb[76].mxu0 %v2329_v3  ;;  %v2133_v60 = vadd.f32 %v4163_v27, %v2053_v18  ;;  %v2069_v44 = vadd.f32 %v4123_v55, %v6076_v16 }
 0x240   : > { %v2136_v61 = vadd.f32 %v4166_v56, %v2056_v35  ;;  %v2072_v13 = vadd.f32 %v4126_v45, %v6076_v16 }
 0x242   : > { %v4127_v63 = vpop.f32.mrb[56].mxu1  ;;  %v4167_v0 = vpop.f32.mrb[60].mxu0 }
 0x243   : > { %v4128_v4 = vpop.f32.mrb[57].mxu1  ;;  %v4168_v57 = vpop.f32.mrb[61].mxu0 }
 0x244   : > { %v4129_v58 = vadd.f32 %v4128_v4, %v4127_v63  ;;  %v4169_v47 = vadd.f32 %v4168_v57, %v4167_v0  ;;  %v4130_v22 = vpop.f32.mrb[58].mxu1  ;;  %v4170_v23 = vpop.f32.mrb[62].mxu0 }
 0x245   : > { %v4131_v24 = vpop.f32.mrb[59].mxu1  ;;  %v4171_v11 = vpop.f32.mrb[63].mxu0 }
 0x246   : > { %v4172_v48 = vadd.f32 %v4171_v11, %v4170_v23  ;;  %v2141_v9 = vadd.f32 %v4169_v47, %v2061_v36 }
 0x248   : > { %v2144_v15 = vadd.f32 %v4172_v48, %v2064_v39 }
 0x24a   : > { %v4173_v42 = vpop.f32.mrb[64].mxu0  ;;  %v4395_v49 = vpop.f32.mrb[60].mxu1 }
 0x24b   : > { %v2205_v17 = vadd.f32 %v4395_v49, %v2125_v41  ;;  %v4174_v37 = vpop.f32.mrb[65].mxu0  ;;  %v2196_v5 = vpop.f32.mrb[61].mxu1 }
 0x24c   : > { %v4175_v40 = vadd.f32 %v4174_v37, %v4173_v42  ;;  %v2197_v62 = vadd.f32 %v2196_v5, %v6088_v25  ;;  %v4176_v1 = vpop.f32.mrb[66].mxu0  ;;  %v4396_v8 = vpop.f32.mrb[62].mxu1  ;;  %v2309_v37 = vld [vmem:[#allocation3 + $0x1a] sm:$0xff] }
 0x24d   : > { %v2244_v14 = vmax.f32 %v2205_v17, 0.0  ;;  %v2208_v6 = vadd.f32 %v4396_v8, %v2128_v52  ;;  %v4177_v19 = vpop.f32.mrb[67].mxu0  ;;  %v2199_v20 = vpop.f32.mrb[63].mxu1  ;;  %v2077_v52 = vadd.f32 %v4129_v58, %v6076_v16  ;;  %v2308_v8 = vld [vmem:[#allocation3 + $0x12] sm:$0xff] }
 0x24e   : > { %v2242_v28 = vmax.f32 %v2197_v62, 0.0  ;;  %v4178_v34 = vadd.f32 %v4177_v19, %v4176_v1  ;;  %v2200_v32 = vadd.f32 %v2199_v20, %v6090_v54  ;;  %v2149_v46 = vadd.f32 %v4175_v40, %v2069_v44  ;;  %v2314_v44 = vld [vmem:[#allocation3 + $0x13] sm:$0xff] }
 0x24f   : > { %2255 = vst [vmem:[#allocation2 + $0x10] sm:$0xff] %v2244_v14  ;;  %v2245_v50 = vmax.f32 %v2208_v6, 0.0  ;;  %v2331_v14 = vpack.c.bf16 %v2309_v37, %v2308_v8  ;;  %v4772_v37 = vld [vmem:[#allocation9 + $0x78] sm:$0xff]  }
 0x250   : > { %2253 = vst [vmem:[#allocation2] sm:$0xff] %v2242_v28  ;;  %v2243_v41 = vmax.f32 %v2200_v32, 0.0  ;;  %v2152_v38 = vadd.f32 %v4178_v34, %v2072_v13 }
 0x251   : > { %2256 = vst [vmem:[#allocation2 + $0x18] sm:$0xff] %v2245_v50 }
 0x252   : > { %2254 = vst [vmem:[#allocation2 + $0x8] sm:$0xff] %v2243_v41  ;;  %v4179_v25 = vpop.f32.mrb[68].mxu0  ;;  %v4399_v33 = vpop.f32.mrb[64].mxu1 }
 0x253   : > { %v2221_v53 = vadd.f32 %v4399_v33, %v2141_v9  ;;  %v4180_v12 = vpop.f32.mrb[69].mxu0  ;;  %v2212_v51 = vpop.f32.mrb[65].mxu1  ;;  %v2319_v33 = vld [vmem:[#allocation3 + $0xc] sm:$0xff] }
 0x254   : > { %v4181_v26 = vadd.f32 %v4180_v12, %v4179_v25  ;;  %v2213_v21 = vadd.f32 %v2212_v51, %v2133_v60  ;;  %v4400_v10 = vpop.f32.mrb[66].mxu1  ;;  %v4182_v7 = vpop.f32.mrb[70].mxu0 }
 0x255   : > { %v2248_v54 = vmax.f32 %v2221_v53, 0.0  ;;  %v2224_v59 = vadd.f32 %v4400_v10, %v2144_v15  ;;  %v2215_v18 = vpop.f32.mrb[67].mxu1  ;;  %v4183_v55 = vpop.f32.mrb[71].mxu0  ;;  %v2318_v53 = vld [vmem:[#allocation3 + $0x4] sm:$0xff] }
 0x256   : > { %v2246_v27 = vmax.f32 %v2213_v21, 0.0  ;;  %v2216_v29 = vadd.f32 %v2215_v18, %v2136_v61  ;;  %v2157_v2 = vadd.f32 %v4181_v26, %v2077_v52  ;;  %v2328_v12 = vpack.c.bf16 %v2319_v33, %v2318_v53  ;;  %v2320_v52 = vld [vmem:[#allocation3 + $0x14] sm:$0xff] }
 0x257   : > { %2259 = vst [vmem:[#allocation2 + $0x30] sm:$0xff] %v2248_v54  ;;  %v2249_v3 = vmax.f32 %v2224_v59, 0.0  ;;  %v4744_v54 = vld [vmem:[#allocation9 + $0x40] sm:$0xff]  }
 0x258   : > { %2257 = vst [vmem:[#allocation2 + $0x20] sm:$0xff] %v2246_v27  ;;  %v2247_v30 = vmax.f32 %v2216_v29, 0.0  ;;  %v4745_v59 = vld [vmem:[#allocation9] sm:$0xff]   ;;  %4278 = vmatprep.subr.bf16.mxu1 %v4744_v54  ;;  %v4748_v27 = vld [vmem:[#allocation9 + $0x48] sm:$0xff]  }
 0x259   : > { %2260 = vst [vmem:[#allocation2 + $0x38] sm:$0xff] %v2249_v3  ;;  %v4746_v18 = vld [vmem:[#allocation9 + $0xc0] sm:$0xff]   ;;  %4279 = vmatpush3.bf16.msra.mxu1 %v4745_v59  ;;  %v4749_v29 = vld [vmem:[#allocation9 + $0x8] sm:$0xff]  }
 0x25a   : > { %2258 = vst [vmem:[#allocation2 + $0x28] sm:$0xff] %v2247_v30  ;;  %v4403_v31 = vpop.f32.mrb[68].mxu1  ;;  %v4747_v55 = vld [vmem:[#allocation9 + $0x80] sm:$0xff]   ;;  %4300 = vmatprep.subr.bf16.mxu0 %v4746_v18  ;;  %v4751_v3 = vld [vmem:[#allocation9 + $0x88] sm:$0xff]   ;;  %4280 = vmatprep.subr.bf16.mxu1 %v4748_v27  ;;  %v4752_v30 = vld [vmem:[#allocation9 + $0x50] sm:$0xff]  }
 0x25b   : > { %v2237_v35 = vadd.f32 %v4403_v31, %v2157_v2  ;;  %v2228_v16 = vpop.f32.mrb[69].mxu1  ;;  %v4750_v2 = vld [vmem:[#allocation9 + $0xc8] sm:$0xff]  }
 0x25c   : > { %v2229_v45 = vadd.f32 %v2228_v16, %v2149_v46  ;;  %v4404_v56 = vpop.f32.mrb[70].mxu1  ;;  %v4754_v16 = vld [vmem:[#allocation9 + $0xd0] sm:$0xff]  }
 0x25d   : > { %v2252_v60 = vmax.f32 %v2237_v35, 0.0  ;;  %v2231_v63 = vpop.f32.mrb[71].mxu1  ;;  %4281 = vmatpush3.bf16.msra.mxu1 %v4749_v29  ;;  %v4753_v35 = vld [vmem:[#allocation9 + $0x10] sm:$0xff]  }
 0x25e   : > { %v2250_v0 = vmax.f32 %v2229_v45, 0.0  ;;  %v2232_v4 = vadd.f32 %v2231_v63, %v2152_v38  ;;  %4282 = vmatprep.subr.bf16.mxu1 %v4752_v30  ;;  %v4755_v56 = vld [vmem:[#allocation9 + $0x90] sm:$0xff]  }
 0x25f   : > { %2263 = vst [vmem:[#allocation2 + $0x50] sm:$0x1f] %v2252_v60  ;;  %v2264_v57 = vld [vmem:[#allocation2] ss:$5 sm:$0xff]  ;;  %v2267_v36 = vld [vmem:[#allocation2 + $0x1] ss:$5 sm:$0xff] }
 0x260   : > { %2261 = vst [vmem:[#allocation2 + $0x40] sm:$0xff] %v2250_v0  ;;  %v2251_v61 = vmax.f32 %v2232_v4, 0.0  ;;  %v2270_v58 = vmax.f32 %v2264_v57, %v2267_v36  ;;  %v2273_v47 = vld [vmem:[#allocation2 + $0x2] ss:$5 sm:$0xff]  ;;  %v2279_v23 = vld [vmem:[#allocation2 + $0x3] ss:$5 sm:$0xff] }
 0x261   : > { %v2285_v11 = vld [vmem:[#allocation2 + $0x4] ss:$5 sm:$0xff]  ;;  %4283 = vmatpush3.bf16.msra.mxu1 %v4753_v35 }
 0x262   : > { %2262 = vst [vmem:[#allocation2 + $0x48] sm:$0xff] %v2251_v61  ;;  %v2276_v22 = vmax.f32 %v2270_v58, %v2273_v47  ;;  %v4756_v4 = vld [vmem:[#allocation9 + $0x58] sm:$0xff]   ;;  %v4760_v47 = vld [vmem:[#allocation9 + $0x60] sm:$0xff]  }
 0x263   : > { %v4757_v36 = vld [vmem:[#allocation9 + $0x18] sm:$0xff]   ;;  %4284 = vmatprep.subr.bf16.mxu1 %v4756_v4 }
 0x264   : > { %v2282_v24 = vmax.f32 %v2276_v22, %v2279_v23  ;;  %v4758_v61 = vld [vmem:[#allocation9 + $0xd8] sm:$0xff]   ;;  %v4762_v22 = vld [vmem:[#allocation9 + $0xe0] sm:$0xff]  }
 0x265   : > { %v4759_v58 = vld [vmem:[#allocation9 + $0x98] sm:$0xff]   ;;  %4285 = vmatpush3.bf16.msra.mxu1 %v4757_v36  ;;  %v4761_v23 = vld [vmem:[#allocation9 + $0x20] sm:$0xff]  }
 0x266   : > { %v2288_v39 = vmax.f32 %v2282_v24, %v2285_v11  ;;  %4286 = vmatprep.subr.bf16.mxu1 %v4760_v47  ;;  %v4763_v24 = vld [vmem:[#allocation9 + $0xa0] sm:$0xff]   ;;  %v4764_v11 = vld [vmem:[#allocation9 + $0x68] sm:$0xff]  }
 0x268   : > { %2291 = vst [vmem:[#allocation3 + $0x22] sm:$0xff] %v2288_v39 }
 0x269   : > { %v2265_v48 = vld [vmem:[#allocation2 + $0x28] ss:$5 sm:$0xff]  ;;  %v2268_v9 = vld [vmem:[#allocation2 + $0x29] ss:$5 sm:$0xff]  ;;  %4287 = vmatpush3.bf16.msra.mxu1 %v4761_v23 }
 0x26a   : > { %v2271_v15 = vmax.f32 %v2265_v48, %v2268_v9  ;;  %v2274_v42 = vld [vmem:[#allocation2 + $0x2a] ss:$5 sm:$0xff]  ;;  %v2280_v17 = vld [vmem:[#allocation2 + $0x2b] ss:$5 sm:$0xff]  ;;  %4288 = vmatprep.subr.bf16.mxu1 %v4764_v11 }
 0x26b   : > { %v2286_v62 = vld [vmem:[#allocation2 + $0x2c] ss:$5 sm:$0xff] }
 0x26c   : > { %v2277_v49 = vmax.f32 %v2271_v15, %v2274_v42  ;;  %v4765_v48 = vld [vmem:[#allocation9 + $0x28] sm:$0xff]   ;;  %v4768_v15 = vld [vmem:[#allocation9 + $0x70] sm:$0xff]  }
 0x26d   : > { %v4767_v9 = vld [vmem:[#allocation9 + $0xa8] sm:$0xff]   ;;  %v4770_v42 = vld [vmem:[#allocation9 + $0xf0] sm:$0xff]   ;;  %4289 = vmatpush3.bf16.msra.mxu1 %v4765_v48 }
 0x26e   : > { %v2283_v5 = vmax.f32 %v2277_v49, %v2280_v17  ;;  %v4769_v49 = vld [vmem:[#allocation9 + $0x30] sm:$0xff]   ;;  %4290 = vmatprep.subr.bf16.mxu1 %v4768_v15 }
 0x26f   : > { %v2315_v40 = vld [vmem:[#allocation3 + $0x1b] sm:$0xff]  ;;  %v4771_v17 = vld [vmem:[#allocation9 + $0xb0] sm:$0xff]  }
 0x270   : > { %v2332_v1 = vpack.c.bf16 %v2315_v40, %v2314_v44  ;;  %v2289_v13 = vmax.f32 %v2283_v5, %v2286_v62  ;;  %v2304_v6 = vld [vmem:[#allocation3 + $0x21] sm:$0xff]  ;;  %v4774_v5 = vld [vmem:[#allocation9 + $0xf8] sm:$0xff]  }
 0x271   : > { %v2298_v46 = vld [vmem:[#allocation3 + $0x20] sm:$0xff]  ;;  %4291 = vmatpush3.bf16.msra.mxu1 %v4769_v49  ;;  %v4773_v44 = vld [vmem:[#allocation9 + $0x38] sm:$0xff]  }
 0x272   : > { %2763 = vmatprep.mubr.bf16.mxu1 %v2332_v1  ;;  %2292 = vst [vmem:[#allocation3 + $0x2a] sm:$0xff] %v2289_v13  ;;  %v2321_v51 = vld [vmem:[#allocation3 + $0x1c] sm:$0xff]  ;;  %4292 = vmatprep.subr.bf16.mxu1 %v4772_v37  ;;  %v4775_v40 = vld [vmem:[#allocation9 + $0xb8] sm:$0xff]  }
 0x273   : > { %2764 = vmatmul.mubr.bf16.gmra.mrb[76].mxu1 %v2331_v14  ;;  %v2333_v26 = vpack.c.bf16 %v2321_v51, %v2320_v52  ;;  %v3810_v62 = vld [vmem:[#allocation7] ss:$0 sm:$0xff] }
 0x275   : > { %4293 = vmatpush3.bf16.msra.mxu1 %v4773_v44 }
 0x276   : > { %4433 = vmatprep.subr.bf16.mxu1 %v5085_v43 }
 0x279   : > { %v2305_v19 = vld [vmem:[#allocation3 + $0x29] sm:$0x1f] }
 0x27a   : > { %v2316_v20 = vld [vmem:[#allocation3 + $0x23] sm:$0xff]  ;;  %v2317_v28 = vld [vmem:[#allocation3 + $0x2b] sm:$0x1f]  ;;  %v2335_v34 = vpack.c.bf16 %v2305_v19, %v2304_v6 }
 0x27b   : > { %v2337_v32 = vpack.c.bf16 %v2317_v28, %v2316_v20  ;;  %v2299_v50 = vld [vmem:[#allocation3 + $0x28] sm:$0x1f] }
 0x27c   : > { %v2311_v41 = vld [vmem:[#allocation3 + $0x2a] sm:$0x1f]  ;;  %v2334_v38 = vpack.c.bf16 %v2299_v50, %v2298_v46  ;;  %2714 = vmatprep.mubr.bf16.mxu0 %v2335_v34 }
 0x27d   : > { %v2336_v25 = vpack.c.bf16 %v2311_v41, %v2288_v39  ;;  %2771 = vmatprep.mubr.bf16.mxu1 %v2337_v32  ;;  %v2322_v21 = vld [vmem:[#allocation3 + $0x24] sm:$0xff]  ;;  %v2323_v10 = vld [vmem:[#allocation3 + $0x2c] sm:$0x1f] }
 0x27e   : > { %2715 = vmatmul.mubr.bf16.gmra.mrb[80].mxu0 %v2334_v38  ;;  %v2338_v7 = vpack.c.bf16 %v2323_v10, %v2322_v21  ;;  %v4766_v39 = vld [vmem:[#allocation9 + $0xe8] sm:$0xff]  }
 0x27f   : > { %2772 = vmatmul.mubr.bf16.gmra.mrb[80].mxu1 %v2336_v25  ;;  %4421 = vmatprep.mubr.msk.bf16.mxu0 %vm5086_vm4, %v5085_v43 }
 0x286   : > { %4422 = vmatmul.mubr.bf16.vlgmr.msra.gmra.mrb[84].mxu0 %v2328_v12 }
 0x287   : > { %4425 = vmatprep.mubr.msk.bf16.mxu0 %vm5086_vm4, %v5085_v43  ;;  %4301 = vmatpush3.bf16.msra.mxu0 %v4747_v55 }
 0x288   : > { %4302 = vmatprep.subr.bf16.mxu0 %v4750_v2 }
 0x28b   : > { %4303 = vmatpush3.bf16.msra.mxu0 %v4751_v3 }
 0x28c   : > { %4304 = vmatprep.subr.bf16.mxu0 %v4754_v16 }
 0x28e   : > { %4426 = vmatmul.mubr.bf16.gmra.mrb[88].mxu0 %v2333_v26 }
 0x28f   : > { %4429 = vmatprep.mubr.msk.bf16.mxu0 %vm5086_vm4, %v5085_v43  ;;  %4305 = vmatpush3.bf16.msra.mxu0 %v4755_v56 }
 0x290   : > { %4306 = vmatprep.subr.bf16.mxu0 %v4758_v61 }
 0x293   : > { %4307 = vmatpush3.bf16.msra.mxu0 %v4759_v58 }
 0x294   : > { %4308 = vmatprep.subr.bf16.mxu0 %v4762_v22 }
 0x296   : > { %4430 = vmatmul.mubr.bf16.gmra.mrb[92].mxu0 %v2338_v7 }
 0x297   : > { %4309 = vmatpush3.bf16.msra.mxu0 %v4763_v24 }
 0x298   : > { %4310 = vmatprep.subr.bf16.mxu0 %v4766_v39 }
 0x29b   : > { %4311 = vmatpush3.bf16.msra.mxu0 %v4767_v9 }
 0x29c   : > { %4312 = vmatprep.subr.bf16.mxu0 %v4770_v42 }
 0x29f   : > { %4313 = vmatpush3.bf16.msra.mxu0 %v4771_v17 }
 0x2a0   : > { %4314 = vmatprep.subr.bf16.mxu0 %v4774_v5 }
 0x2a3   : > { %4315 = vmatpush3.bf16.msra.mxu0 %v4775_v40 }
 0x2a4   : > { %4453 = vmatprep.subr.bf16.mxu0 %v5085_v43 }
 0x2ea   : > { %v4215_v31 = vpop.f32.mrb[72].mxu0 }
 0x2eb   : > { %v4216_v45 = vpop.f32.mrb[73].mxu0 }
 0x2ec   : > { %v4217_v60 = vadd.f32 %v4216_v45, %v4215_v31  ;;  %v4218_v63 = vpop.f32.mrb[74].mxu0 }
 0x2ed   : > { %v4219_v0 = vpop.f32.mrb[75].mxu0 }
 0x2ee   : > { %v4220_v57 = vadd.f32 %v4219_v0, %v4218_v63  ;;  %v2701_v13 = vadd.f32 %v4217_v60, %v3810_v62 }
 0x2f0   : > { %v2704_v20 = vadd.f32 %v4220_v57, %v3810_v62 }
 0x300   : > { %v4249_v1 = vpop.f32.mrb[72].mxu1 }
 0x301   : > { %v4250_v8 = vpop.f32.mrb[73].mxu1 }
 0x302   : > { %v4251_v14 = vadd.f32 %v4250_v8, %v4249_v1  ;;  %v4252_v6 = vpop.f32.mrb[74].mxu1 }
 0x303   : > { %v4253_v19 = vpop.f32.mrb[75].mxu1 }
 0x304   : > { %v4254_v28 = vadd.f32 %v4253_v19, %v4252_v6  ;;  %v2758_v34 = vadd.f32 %v4251_v14, %v2701_v13 }
 0x306   : > { %v2761_v32 = vadd.f32 %v4254_v28, %v2704_v20 }
 0x311   : > { %v4221_v46 = vpop.f32.mrb[76].mxu0 }
 0x312   : > { %v4222_v50 = vpop.f32.mrb[77].mxu0 }
 0x313   : > { %v4223_v41 = vadd.f32 %v4222_v50, %v4221_v46  ;;  %v4224_v38 = vpop.f32.mrb[78].mxu0 }
 0x314   : > { %v4225_v25 = vpop.f32.mrb[79].mxu0 }
 0x315   : > { %v4226_v33 = vadd.f32 %v4225_v25, %v4224_v38  ;;  %v2709_v51 = vadd.f32 %v4223_v41, %v3810_v62 }
 0x317   : > { %v2712_v10 = vadd.f32 %v4226_v33, %v3810_v62 }
 0x346   : > { %v4255_v53 = vpop.f32.mrb[76].mxu1 }
 0x347   : > { %v4256_v12 = vpop.f32.mrb[77].mxu1 }
 0x348   : > { %v4257_v52 = vadd.f32 %v4256_v12, %v4255_v53  ;;  %v4258_v26 = vpop.f32.mrb[78].mxu1 }
 0x349   : > { %v4259_v21 = vpop.f32.mrb[79].mxu1 }
 0x34a   : > { %v4260_v7 = vadd.f32 %v4259_v21, %v4258_v26  ;;  %v2766_v54 = vadd.f32 %v4257_v52, %v2709_v51  ;;  %v4776_v51 = vld [vmem:[#allocation9 + $0x100] sm:$0xff]   ;;  %v4777_v26 = vld [vmem:[#allocation9 + $0x108] sm:$0xff]  }
 0x34c   : > { %v2769_v59 = vadd.f32 %v4260_v7, %v2712_v10  ;;  %v4778_v7 = vld [vmem:[#allocation9 + $0x110] sm:$0xff]  }
 0x351   : > { %v4227_v18 = vpop.f32.mrb[80].mxu0 }
 0x352   : > { %v4261_v55 = vpop.f32.mrb[80].mxu1  ;;  %v4228_v27 = vpop.f32.mrb[81].mxu0 }
 0x353   : > { %v4262_v29 = vpop.f32.mrb[81].mxu1  ;;  %v4229_v2 = vadd.f32 %v4228_v27, %v4227_v18  ;;  %v4230_v30 = vpop.f32.mrb[82].mxu0  ;;  %v4780_v27 = vld [vmem:[#allocation9 + $0x120] sm:$0xff]  }
 0x354   : > { %v4263_v3 = vadd.f32 %v4262_v29, %v4261_v55  ;;  %v4264_v31 = vpop.f32.mrb[82].mxu1  ;;  %v4231_v35 = vpop.f32.mrb[83].mxu0 }
 0x355   : > { %v4265_v16 = vpop.f32.mrb[83].mxu1  ;;  %v2717_v45 = vadd.f32 %v4229_v2, %v3810_v62  ;;  %v4232_v56 = vadd.f32 %v4231_v35, %v4230_v30  ;;  %v4782_v35 = vld [vmem:[#allocation9 + $0x130] sm:$0xff]  }
 0x356   : > { %v4266_v60 = vadd.f32 %v4265_v16, %v4264_v31 }
 0x357   : > { %v2720_v63 = vadd.f32 %v4232_v56, %v3810_v62  ;;  %v2774_v0 = vadd.f32 %v4263_v3, %v2717_v45  ;;  %v4781_v3 = vld [vmem:[#allocation9 + $0x128] sm:$0xff]   ;;  %v4783_v45 = vld [vmem:[#allocation9 + $0x138] sm:$0xff]  }
 0x359   : > { %v2814_v4 = vpop.f32.mrb[84].mxu0  ;;  %v2777_v57 = vadd.f32 %v4266_v60, %v2720_v63 }
 0x35a   : > { %v2815_v36 = vadd.f32 %v2814_v4, %v2758_v34  ;;  %v4423_v61 = vpop.f32.mrb[85].mxu0  ;;  %v4785_v4 = vld [vmem:[#allocation12 + $0x8] sm:$0xff]  }
 0x35b   : > { %v2817_v58 = vpop.f32.mrb[86].mxu0  ;;  %v4788_v61 = vld [vmem:[#allocation12 + $0x20] sm:$0xff]  }
 0x35c   : > { %v2837_v47 = vmax.f32 %v2815_v36, 0.0  ;;  %v2818_v22 = vadd.f32 %v2817_v58, %v2761_v32  ;;  %v4424_v23 = vpop.f32.mrb[87].mxu0  ;;  %v4787_v36 = vld [vmem:[#allocation12 + $0x18] sm:$0xff]   ;;  %v4789_v58 = vld [vmem:[#allocation12 + $0x28] sm:$0xff]  }
 0x35d   : > { %v4792_v23 = vld [vmem:[%s6232_s13] sm:$0xff]  }
 0x35e   : > { %2843 = vst [vmem:[#allocation2] sm:$0xff] %v2837_v47  ;;  %v2838_v24 = vmax.f32 %v2818_v22, 0.0  ;;  %v4790_v47 = vld [vmem:[#allocation12 + $0x30] sm:$0xff]   ;;  %v4791_v22 = vld [vmem:[#allocation12 + $0x38] sm:$0xff]  }
 0x360   : > { %2844 = vst [vmem:[#allocation2 + $0x8] sm:$0xff] %v2838_v24  ;;  %v4793_v24 = vld [vmem:[%s6232_s13 + $0x8] sm:$0xff]  }
 0x361   : > { %v2822_v11 = vpop.f32.mrb[88].mxu0 }
 0x362   : > { %v2823_v39 = vadd.f32 %v2822_v11, %v2766_v54  ;;  %v4427_v48 = vpop.f32.mrb[89].mxu0  ;;  %v4794_v11 = vld [vmem:[%s6232_s13 + $0x10] sm:$0xff]  }
 0x363   : > { %v2825_v9 = vpop.f32.mrb[90].mxu0  ;;  %v4796_v48 = vld [vmem:[%s6232_s13 + $0x20] sm:$0xff]  }
 0x364   : > { %v2839_v15 = vmax.f32 %v2823_v39, 0.0  ;;  %v2826_v42 = vadd.f32 %v2825_v9, %v2769_v59  ;;  %v4428_v49 = vpop.f32.mrb[91].mxu0  ;;  %v4779_v59 = vld [vmem:[#allocation9 + $0x118] sm:$0xff]   ;;  %v4795_v39 = vld [vmem:[%s6232_s13 + $0x18] sm:$0xff]  }
 0x365   : > { %v4797_v9 = vld [vmem:[%s6232_s13 + $0x28] sm:$0xff]  }
 0x366   : > { %2845 = vst [vmem:[#allocation2 + $0x10] sm:$0xff] %v2839_v15  ;;  %v2840_v17 = vmax.f32 %v2826_v42, 0.0  ;;  %v4798_v15 = vld [vmem:[%s6232_s13 + $0x30] sm:$0xff]  }
 0x368   : > { %2846 = vst [vmem:[#allocation2 + $0x18] sm:$0xff] %v2840_v17  ;;  %v3851_v17 = vld [vmem:[#allocation10] ss:$0 sm:$0xff] }
 0x369   : > { %v2830_v37 = vpop.f32.mrb[92].mxu0 }
 0x36a   : > { %v2831_v5 = vadd.f32 %v2830_v37, %v2774_v0  ;;  %v4431_v44 = vpop.f32.mrb[93].mxu0  ;;  %v4784_v0 = vld [vmem:[#allocation12] sm:$0xff]  }
 0x36b   : > { %v2833_v40 = vpop.f32.mrb[94].mxu0 }
 0x36c   : > { %v2841_v62 = vmax.f32 %v2831_v5, 0.0  ;;  %v2834_v1 = vadd.f32 %v2833_v40, %v2777_v57  ;;  %v4432_v8 = vpop.f32.mrb[95].mxu0  ;;  %v4786_v57 = vld [vmem:[#allocation12 + $0x10] sm:$0xff]  }
 0x36e   : > { %2847 = vst [vmem:[#allocation2 + $0x20] sm:$0xff] %v2841_v62  ;;  %v2842_v13 = vmax.f32 %v2834_v1, 0.0 }
 0x370   : > { %2848 = vst [vmem:[#allocation2 + $0x28] sm:$0x1f] %v2842_v13 }
 0x375   : > { %v2849_v14 = vld [vmem:[#allocation2] ss:$5 sm:$0xff]  ;;  %v2851_v6 = vld [vmem:[#allocation2 + $0x1] ss:$5 sm:$0xff] }
 0x376   : > { %v2853_v19 = vmax.f32 %v2849_v14, %v2851_v6  ;;  %v2855_v20 = vld [vmem:[#allocation2 + $0x2] ss:$5 sm:$0xff]  ;;  %v2860_v34 = vld [vmem:[#allocation2 + $0x3] ss:$5 sm:$0xff] }
 0x377   : > { %v2865_v46 = vld [vmem:[#allocation2 + $0x4] ss:$5 sm:$0xff]  ;;  %v2850_v21 = vld [vmem:[#allocation2 + $0x28] ss:$5 sm:$0x1] }
 0x378   : > { %v2857_v28 = vmax.f32 %v2853_v19, %v2855_v20  ;;  %v2852_v10 = vld [vmem:[#allocation2 + $0x29] ss:$5 sm:$0x1]  ;;  %v2856_v18 = vld [vmem:[#allocation2 + $0x2a] ss:$5 sm:$0x1] }
 0x379   : > { %v2854_v54 = vmax.f32 %v2850_v21, %v2852_v10  ;;  %v2862_v29 = vld [vmem:[#allocation2 + $0x2b] ss:$5 sm:$0x1]  ;;  %v2866_v30 = vld [vmem:[#allocation2 + $0x2c] ss:$5 sm:$0x1] }
 0x37a   : > { %v2863_v32 = vmax.f32 %v2857_v28, %v2860_v34 }
 0x37b   : > { %v2858_v55 = vmax.f32 %v2854_v54, %v2856_v18  ;;  %v3464_v18 = vld [vmem:[#allocation15] sm:$0x1] }
 0x37c   : > { %v2867_v50 = vmax.f32 %v2863_v32, %v2865_v46 }
 0x37d   : > { %v2864_v2 = vmax.f32 %v2858_v55, %v2862_v29 }
 0x37e   : > { %v2870_v41 = vrot.slane %v2867_v50, 1  ;;  %v2874_v38 = vrot.slane %v2867_v50, 3  ;;  %v2872_v25 = vrot.slane %v2867_v50, 2  ;;  %v2881_v52 = vpack.c.bf16 %v2867_v50, %v2867_v50 }
 0x37f   : > { %v2868_v31 = vmax.f32 %v2864_v2, %v2866_v30  ;;  %v2877_v56 = vrot.slane %v2867_v50, 4 }
 0x380   : > { %v2882_v33 = vpack.c.bf16 %v2870_v41, %v2870_v41  ;;  %v2884_v53 = vpack.c.bf16 %v2874_v38, %v2874_v38  ;;  %v2883_v12 = vpack.c.bf16 %v2872_v25, %v2872_v25 }
 0x381   : > { %v2878_v16 = vrot.slane %v2868_v31, 4 }
 0x382   : > { %3245 = vmatprep.mubr.bf16.mxu1 %v2882_v33  ;;  %3285 = vmatprep.mubr.bf16.mxu0 %v2884_v53 }
 0x383   : > { %3246 = vmatmul.mubr.bf16.vlgmr.msra.gmra.mrb[84].mxu1 %v2881_v52  ;;  %3286 = vmatmul.mubr.bf16.vlgmr.msra.gmra.mrb[96].mxu0 %v2883_v12  ;;  %v2879_v60 = vsel %vm1634_vm2, %v2877_v56, %v2878_v16  ;;  %v3358_v52 = vld [vmem:[#allocation13] sm:$0x1] }
 0x384   : > { %4434 = vmatpush3.bf16.msra.mxu1 %v4776_v51  ;;  %4449 = vmatprep.mubr.msk.bf16.mxu1 %vm5086_vm4, %v5085_v43  ;;  %v2885_v63 = vpack.c.bf16 %v2879_v60, %v2879_v60  ;;  %v4799_v51 = vld [vmem:[%s6232_s13 + $0x38] sm:$0xff]  }
 0x385   : > { %4435 = vmatprep.subr.bf16.mxu1 %v5085_v43  ;;  %4469 = vmatprep.mubr.msk.bf16.mxu0 %vm5086_vm4, %v5085_v43 }
 0x386   : > { %4454 = vmatpush3.bf16.msra.mxu0 %v4784_v0 }
 0x387   : > { %4455 = vmatprep.subr.bf16.mxu0 %v5085_v43 }
 0x388   : > { %4436 = vmatpush3.bf16.msra.mxu1 %v4777_v26 }
 0x389   : > { %4437 = vmatprep.subr.bf16.mxu1 %v5085_v43 }
 0x38a   : > { %4456 = vmatpush3.bf16.msra.mxu0 %v4785_v4 }
 0x38b   : > { %4457 = vmatprep.subr.bf16.mxu0 %v5085_v43 }
 0x38c   : > { %4438 = vmatpush3.bf16.msra.mxu1 %v4778_v7 }
 0x38d   : > { %4439 = vmatprep.subr.bf16.mxu1 %v5085_v43 }
 0x38e   : > { %4458 = vmatpush3.bf16.msra.mxu0 %v4786_v57 }
 0x38f   : > { %4459 = vmatprep.subr.bf16.mxu0 %v5085_v43 }
 0x390   : > { %4440 = vmatpush3.bf16.msra.mxu1 %v4779_v59 }
 0x391   : > { %4441 = vmatprep.subr.bf16.mxu1 %v5085_v43 }
 0x392   : > { %4460 = vmatpush3.bf16.msra.mxu0 %v4787_v36 }
 0x393   : > { %4461 = vmatprep.subr.bf16.mxu0 %v5085_v43 }
 0x394   : > { %4442 = vmatpush3.bf16.msra.mxu1 %v4780_v27 }
 0x395   : > { %4443 = vmatprep.subr.bf16.mxu1 %v5085_v43 }
 0x396   : > { %4462 = vmatpush3.bf16.msra.mxu0 %v4788_v61 }
 0x397   : > { %4463 = vmatprep.subr.bf16.mxu0 %v5085_v43 }
 0x398   : > { %4444 = vmatpush3.bf16.msra.mxu1 %v4781_v3 }
 0x399   : > { %4445 = vmatprep.subr.bf16.mxu1 %v5085_v43 }
 0x39a   : > { %4464 = vmatpush3.bf16.msra.mxu0 %v4789_v58 }
 0x39b   : > { %4465 = vmatprep.subr.bf16.mxu0 %v5085_v43 }
 0x39c   : > { %4446 = vmatpush3.bf16.msra.mxu1 %v4782_v35 }
 0x39d   : > { %4447 = vmatprep.subr.bf16.mxu1 %v5085_v43 }
 0x39e   : > { %4466 = vmatpush3.bf16.msra.mxu0 %v4790_v47 }
 0x39f   : > { %4467 = vmatprep.subr.bf16.mxu0 %v5085_v43 }
 0x3a0   : > { %4448 = vmatpush3.bf16.msra.mxu1 %v4783_v45 }
 0x3a1   : > { %4473 = vmatprep.subr.bf16.mxu1 %v5085_v43 }
 0x3a2   : > { %4468 = vmatpush3.bf16.msra.mxu0 %v4791_v22 }
 0x3a3   : > { %4450 = vmatmul.mubr.bf16.vlgmr.msra.gmra.mrb[88].mxu1 %v2885_v63 }
 0x3a4   : > { %4489 = vmatprep.mubr.msk.bf16.mxu1 %vm5086_vm4, %v5085_v43  ;;  %4474 = vmatpush3.bf16.msra.mxu1 %v4792_v23 }
 0x3a5   : > { %4475 = vmatprep.subr.bf16.mxu1 %v5085_v43 }
 0x3a8   : > { %4476 = vmatpush3.bf16.msra.mxu1 %v4793_v24 }
 0x3a9   : > { %4477 = vmatprep.subr.bf16.mxu1 %v5085_v43 }
 0x3ac   : > { %4478 = vmatpush3.bf16.msra.mxu1 %v4794_v11 }
 0x3ad   : > { %4479 = vmatprep.subr.bf16.mxu1 %v5085_v43 }
 0x3b0   : > { %4480 = vmatpush3.bf16.msra.mxu1 %v4795_v39 }
 0x3b1   : > { %4481 = vmatprep.subr.bf16.mxu1 %v5085_v43 }
 0x3b4   : > { %4482 = vmatpush3.bf16.msra.mxu1 %v4796_v48 }
 0x3b5   : > { %4483 = vmatprep.subr.bf16.mxu1 %v5085_v43 }
 0x3b8   : > { %4484 = vmatpush3.bf16.msra.mxu1 %v4797_v9 }
 0x3b9   : > { %4485 = vmatprep.subr.bf16.mxu1 %v5085_v43 }
 0x3bc   : > { %4486 = vmatpush3.bf16.msra.mxu1 %v4798_v15 }
 0x3bd   : > { %4487 = vmatprep.subr.bf16.mxu1 %v5085_v43 }
 0x3c0   : > { %4488 = vmatpush3.bf16.msra.mxu1 %v4799_v51 }
 0x456   : > { %v4294_v42 = vpop.f32.mrb[84].mxu1  ;;  %v4316_v49 = vpop.f32.mrb[96].mxu0 }
 0x457   : > { %v4295_v37 = vpop.f32.mrb[85].mxu1  ;;  %v4317_v5 = vpop.f32.mrb[97].mxu0 }
 0x458   : > { %v4296_v44 = vadd.f32 %v4295_v37, %v4294_v42  ;;  %v4318_v40 = vadd.f32 %v4317_v5, %v4316_v49  ;;  %v4297_v62 = vpop.f32.mrb[86].mxu1  ;;  %v4319_v1 = vpop.f32.mrb[98].mxu0 }
 0x459   : > { %v4298_v8 = vpop.f32.mrb[87].mxu1  ;;  %v4320_v13 = vpop.f32.mrb[99].mxu0 }
 0x45a   : > { %v3248_v14 = vadd.f32 %v4296_v44, %v3851_v17 }
 0x45c   : > { %v3288_v6 = vadd.f32 %v4318_v40, %v3248_v14 }
 0x476   : > { %v3327_v19 = vpop.f32.mrb[88].mxu1 }
 0x477   : > { %v3328_v20 = vadd.f32 %v3327_v19, %v3288_v6  ;;  %v4451_v28 = vpop.f32.mrb[89].mxu1 }
 0x478   : > { %v3330_v34 = vpop.f32.mrb[90].mxu1 }
 0x479   : > { %v3333_v32 = vmax.f32 %v3328_v20, 0.0  ;;  %v4452_v46 = vpop.f32.mrb[91].mxu1 }
 0x47b   : > { %v3334_v43 = vsel %vm1119_vm3, %v3333_v32, -inf }
 0x47c   : > { %v3335_v50 = vrot.slane %v3334_v43, 4 }
 0x47e   : > { %v3336_v41 = vmax.f32 %v3334_v43, %v3335_v50 }
 0x480   : > { %v3337_v38 = vrot.slane %v3336_v41, 2 }
 0x482   : > { %v3338_v25 = vmax.f32 %v3336_v41, %v3337_v38 }
 0x484   : > { %v3339_v33 = vrot.slane %v3338_v25, 1 }
 0x486   : > { %v3340_v53 = vmax.f32 %v3338_v25, %v3339_v33 }
 0x488   : > { %v3341_v12 = vpack.c.bf16 %v3340_v53, %v3340_v53 }
 0x48a   : > { %4470 = vmatmul.mubr.bf16.vlgmr.msra.gmra.mrb[100].mxu0 %v3341_v12 }
 0x55d   : > { %v3441_v26 = vpop.f32.mrb[100].mxu0 }
 0x55e   : > { %v3442_v21 = vadd.f32 %v3441_v26, %v3358_v52  ;;  %v4471_v10 = vpop.f32.mrb[101].mxu0 }
 0x55f   : > { %v3444_v7 = vpop.f32.mrb[102].mxu0 }
 0x560   : > { %v3447_v54 = vpack.c.bf16 %v3442_v21, %v3442_v21  ;;  %v4472_v59 = vpop.f32.mrb[103].mxu0 }
 0x562   : > { %4490 = vmatmul.mubr.bf16.vlgmr.msra.gmra.mrb[92].mxu1 %v3447_v54 }
 0x635   : > { %v3547_v55 = vpop.f32.mrb[92].mxu1 }
 0x636   : > { %v3548_v27 = vadd.f32 %v3547_v55, %v3464_v18  ;;  %v4491_v29 = vpop.f32.mrb[93].mxu1 }
 0x637   : > { %v3550_v2 = vpop.f32.mrb[94].mxu1 }
 0x638   : > { %v4492_v3 = vpop.f32.mrb[95].mxu1  ;;  %3554 = vst.msk [vmem:[%s580_s18] sm:$0x1] %vm3553_vm5, %v3548_v27 }
 0x639   : > { %5009 = shalt.err (!%p5006_p6)
}
 0x63a   : > { %s5010_s30 = scalar_lea.hbm %s6177_s24, 16  ;;  %s5014_s8 = scalar_lea.hbm %s6278_s15, 32 }
 0x63b   : > { %p5011_p5 = scmp.ne.s32.totalorder %s6177_s24, %s5010_s30  ;;  %p5015_p10 = scmp.lt.u32.totalorder %s6177_s24, %s6278_s15 }
 0x63c   : > { %p5016_p2 = scmp.lt.u32.totalorder %s5014_s8, %s5010_s30  ;;  %p5018_p4 = scmp.lt.u32.totalorder %s5010_s30, %s6177_s24 }
 0x63d   : > { %p5012_p9 = pnand %p5011_p5, %p6279_p7 }
 0x63e   : > { %p5017_p3 = por %p5016_p2, %p5015_p10 }
 0x63f   : > { %p5013_p12 = pneg %p5012_p9 }
 0x640   : > { %p5019_p8 = por %p5018_p4, %p5017_p3 }
 0x642   : > { %p5020_p11 = pnand %p5019_p8, %p5013_p12 }
 0x644   : > { %5023 = shalt.err (!%p5020_p11)
}
 0x645   : > { %4522 = dma.vmem_to_hbm [thread:$0]  (%p6279_p7), %s6179_s25, 16, %s6177_s24, %s3556_s22  }
 0x646 PF: > { %s6280_s29 = sld [smem:[#allocation25_spill]]  ;;  %s6281_s19 = sld [smem:[#allocation22_spill]] }
 0x647   : > { %s6282_s20 = sld [smem:[#allocation29_spill]] }
 0x64c   : > { %p4564_p13 = scmp.ge.s32.totalorder %s6280_s29, 2  ;;  %s3580_s28 = sand.u32 1, %s6281_s19  }
 0x64d   : > { %p6283_p1 = scmp.ne.s32.totalorder %s6282_s20, 0  ;;  %s3581_s21 = scalar_lea.sflag [#allocation6], %s3580_s28 }
 0x64f   : > { %p4547_p0 = pnand %p4564_p13, %p6283_p1 }
 0x651   : > { %5057 = dma.done.wait (!%p4547_p0), %s3581_s21, 16  }
 0x652   : > { %5059 = vsyncadd (!%p4547_p0), %s3581_s21, 4294967280  ;;  %s6284_s21 = sld [smem:[#allocation26_spill]]  ;;  %s6285_s18 = sld [smem:[#allocation23_spill]] }
 0x653   : > { %s6286_s19 = sld [smem:[#allocation24_spill]]  ;;  %s6287_s20 = sld [smem:[#allocation27_spill]] }
 0x658   : > { %p29_p6 = scmp.ge.s32.totalorder %s6284_s21, 4  }
 0x65a   :  { %31 = sbr.rel (!%p29_p6) target bundleno = 11 (0xb), region = 160 }
 0x661   :  { %3585 = vsyncpa [#allocation5], 1 }
 0x662   :  { %3587 = vsyncpa [#allocation5 + $0x1], 1 }
 0x663   :  { %3588 = vsyncpa [#allocation8], 1 }
 0x664   :  { %3589 = vsyncpa [#allocation11], 1 }
 0x665   :  { %3590 = vsyncpa [#allocation14], 1 }
 0x666   :  { %3591 = vsyncpa [#allocation6], 1 }
 0x667   :  { %3593 = vsyncpa [#allocation6 + $0x1], 1 }

</bundles_post_ra>
